<compile_context>
chip_gen: v7x
topology: tpu7x:2x2x1
jax: 0.10.0
libtpu: 0.0.40
codegen_flags: <defaults>
</compile_context>

<pallas_src>
import functools

import jax
import jax.numpy as jnp
import numpy as np
from jax.experimental import pallas as pl
from jax.experimental.pallas import tpu as pltpu

LANE = 128       # TPU lane width
SUBLANE = 16     # sublane multiple safe for bf16-packed tiles


def _round_up(x, m):
    return ((x + m - 1) // m) * m


# ---------------------------------------------------------------------------
# Kernel
# ---------------------------------------------------------------------------
def actor_kernel(x_ref, w1_ref, b1_ref, w2_ref, b2_ref, w3_ref, b3_ref, out_ref):
    # x arrives in f32; cast to bf16 in-kernel (hidden under the pipeline).
    x = x_ref[...].astype(jnp.bfloat16)
    # fc_first + ReLU: bf16 MXU inputs, f32 accumulation, f32 elementwise.
    h = jnp.dot(x, w1_ref[...], preferred_element_type=jnp.float32)
    h = jnp.maximum(h + b1_ref[...], 0.0)
    # hidden layer (fc_list[0]) + ReLU
    h = jnp.dot(h.astype(jnp.bfloat16), w2_ref[...],
                preferred_element_type=jnp.float32)
    h = jnp.maximum(h + b2_ref[...], 0.0)
    # fc_last (output dim zero-padded to 128 lanes) + tanh, stored as bf16.
    o = jnp.dot(h.astype(jnp.bfloat16), w3_ref[...],
                preferred_element_type=jnp.float32)
    out_ref[...] = jnp.tanh(o + b3_ref[...]).astype(out_ref.dtype)


# ---------------------------------------------------------------------------
# Wrapper
# ---------------------------------------------------------------------------
@functools.partial(jax.jit, static_argnames=("action_size", "tile_b"))
def _actor_forward_impl(x, w1, b1, w2, b2, w3, b3, *, action_size, tile_b):
    """x: [batch, state] f32; wI already bf16 (w3 lane-padded); bI f32 [1, out]."""
    batch, state_size = x.shape
    h1 = w1.shape[1]
    h2 = w2.shape[1]
    n_pad = w3.shape[1]  # lane-padded at prepare time (multiple of 128)

    # Pad the batch up to a multiple of the batch tile (tiny, inside jit).
    b_pad = _round_up(batch, tile_b)
    if b_pad != batch:
        x = jnp.pad(x, ((0, b_pad - batch), (0, 0)))

    grid = (b_pad // tile_b,)

    flops = 2 * b_pad * (state_size * h1 + h1 * h2 + h2 * n_pad)
    transcendentals = b_pad * n_pad  # tanh
    bytes_accessed = (
        x.size * 4 + b_pad * n_pad * 2                      # activations in / out
        + (w1.size + w2.size + w3.size) * 2                 # bf16 weights
        + (b1.size + b2.size + b3.size) * 4                 # f32 biases
    )

    const = lambda i: (0, 0)  # weights / biases: same block every grid step
    out_padded = pl.pallas_call(
        actor_kernel,
        out_shape=jax.ShapeDtypeStruct((b_pad, n_pad), jnp.bfloat16),
        grid=grid,
        in_specs=[
            pl.BlockSpec((tile_b, state_size), lambda i: (i, 0)),  # x tile
            pl.BlockSpec((state_size, h1), const),                 # w1
            pl.BlockSpec((1, h1), const),                          # b1
            pl.BlockSpec((h1, h2), const),                         # w2
            pl.BlockSpec((1, h2), const),                          # b2
            pl.BlockSpec((h2, n_pad), const),                      # w3 (padded)
            pl.BlockSpec((1, n_pad), const),                       # b3 (padded)
        ],
        out_specs=pl.BlockSpec((tile_b, n_pad), lambda i: (i, 0)),
        compiler_params=pltpu.CompilerParams(
            dimension_semantics=("parallel",)),
        cost_estimate=pl.CostEstimate(
            flops=flops,
            transcendentals=transcendentals,
            bytes_accessed=bytes_accessed),
    )(x, w1, b1, w2, b2, w3, b3)

    return out_padded[:batch, :action_size].astype(jnp.float32)


def _pick_tile_b(batch):
    """Grid choice per TPU generation.

    v5e / v6e: single TensorCore -> one grid step (one big M tile; avoids
    ~0.35 us/step pipeline overhead and extra MXU drains).
    v7x: two TensorCores -> at least two 'parallel' grid steps so both cores
    get a batch tile.  Tile cap budgeted against v7x's 64 MiB VMEM (the x +
    output tiles are double-buffered; even tile_b=8192 is only a few MiB).
    """
    try:
        kind = jax.devices()[0].device_kind.lower()
    except Exception:  # no devices visible at trace setup; fall back
        kind = ""
    if "v7" in kind:
        tile = _round_up(pl.cdiv(batch, 2), SUBLANE)
    else:
        tile = _round_up(batch, SUBLANE)
    return int(max(SUBLANE, min(tile, 8192)))


def actor_forward(x, prepped, tile_b=None):
    """Forward pass. `prepped` comes from prepare_actor_params()."""
    if tile_b is None:
        tile_b = _pick_tile_b(x.shape[0])
    return _actor_forward_impl(
        x,
        prepped["w1"], prepped["b1"],
        prepped["w2"], prepped["b2"],
        prepped["w3"], prepped["b3"],
        action_size=prepped["action_size"], tile_b=tile_b)


# ---------------------------------------------------------------------------
# Parameter init / prep (mirrors the PyTorch module)
# ---------------------------------------------------------------------------
def init_actor_params(key, state_size, action_size, hidden_sizes=(256, 128)):
    """Deterministic init mirroring the PyTorch module's reset_parameters().

    hidden_init() uses weight.size()[0] (= out_features) as 'fan_in' for the
    uniform limit of fc_first / hidden weights; fc_last weights ~ U(-3e-3, 3e-3).
    Biases keep PyTorch's default Linear init: U(-1/sqrt(in), 1/sqrt(in)).
    Weights are returned already transposed to [in, out]; biases as [1, out].
    """
    assert len(hidden_sizes) > 0
    dims = [state_size] + list(hidden_sizes) + [action_size]
    params = []
    keys = jax.random.split(key, 2 * (len(dims) - 1))
    for i in range(len(dims) - 1):
        fan_in, fan_out = dims[i], dims[i + 1]
        kw, kb = keys[2 * i], keys[2 * i + 1]
        if i == len(dims) - 2:
            w_lim = 3e-3
        else:
            w_lim = 1.0 / np.sqrt(fan_out)  # hidden_init uses size()[0] == out
        b_lim = 1.0 / np.sqrt(fan_in)
        w = jax.random.uniform(kw, (fan_in, fan_out), jnp.float32, -w_lim, w_lim)
        b = jax.random.uniform(kb, (1, fan_out), jnp.float32, -b_lim, b_lim)
        params.append((w, b))
    return params


def prepare_actor_params(params):
    """One-time preprocessing: bf16 weight cast + lane-padding of the last layer.

    Done OUTSIDE the jitted forward so per-call wall clock contains only the
    pallas_call (this was the dominant overhead before).
    Currently specialized to exactly two hidden layers (default [256, 128]).
    """
    (w1, b1), (w2, b2), (w3, b3) = params
    action_size = int(w3.shape[1])
    n_pad = _round_up(action_size, LANE)
    if n_pad != action_size:
        w3 = jnp.pad(w3, ((0, 0), (0, n_pad - action_size)))
        b3 = jnp.pad(b3, ((0, 0), (0, n_pad - action_size)))
    prepped = {
        "w1": jnp.asarray(w1, jnp.bfloat16), "b1": jnp.asarray(b1, jnp.float32),
        "w2": jnp.asarray(w2, jnp.bfloat16), "b2": jnp.asarray(b2, jnp.float32),
        "w3": jnp.asarray(w3, jnp.bfloat16), "b3": jnp.asarray(b3, jnp.float32),
        "action_size": action_size,
    }
    return jax.tree_util.tree_map(
        lambda a: jax.block_until_ready(a) if isinstance(a, jax.Array) else a,
        prepped)


# ---------------------------------------------------------------------------
# References
# ---------------------------------------------------------------------------
def actor_reference_f32(x, params):
    """Pure f32 JAX reference of the PyTorch forward pass."""
    h = x
    for i, (w, b) in enumerate(params):
        h = h @ w + b
        h = jnp.maximum(h, 0.0) if i < len(params) - 1 else jnp.tanh(h)
    return h


def actor_reference_bf16(x, params):
    """Reference mirroring the kernel's bf16-MXU / f32-accumulate recipe."""
    h = x.astype(jnp.bfloat16)
    for i, (w, b) in enumerate(params):
        z = jnp.dot(h, w.astype(jnp.bfloat16),
                    preferred_element_type=jnp.float32) + b
        h = jnp.maximum(z, 0.0).astype(jnp.bfloat16) if i < len(params) - 1 \
            else jnp.tanh(z)
    return h


if __name__ == "__main__":
    # Small shapes consistent with the module (default hidden_sizes=[256, 128]).
    # batch=500 exercises batch padding and (on v7x) the 2-step parallel grid.
    batch, state_size, action_size = 500, 32, 8
    hidden_sizes = (256, 128)

    key = jax.random.PRNGKey(0)
    k_params, k_x = jax.random.split(key)
    params = init_actor_params(k_params, state_size, action_size, hidden_sizes)
    prepped = prepare_actor_params(params)

    x = jax.random.normal(k_x, (batch, state_size), jnp.float32)

    out = actor_forward(x, prepped)
    out = jax.block_until_ready(out)
    out_np = np.asarray(out)
    assert out_np.shape == (batch, action_size)

    # Check vs. a reference using the same bf16-MXU / f32-accumulate math
    # (tolerance widened slightly for the bf16 output store).
    ref_bf16 = np.asarray(actor_reference_bf16(x, params))
    np.testing.assert_allclose(out_np, ref_bf16, rtol=1e-2, atol=1e-2)

    # Loose check vs. the pure-f32 PyTorch-equivalent forward pass.
    ref_f32 = np.asarray(actor_reference_f32(x, params))
    np.testing.assert_allclose(out_np, ref_f32, rtol=5e-2, atol=5e-2)

    print("KERNEL_OK")
</pallas_src>

<mosaic_0001>
module attributes {stable_mosaic.version = 11 : i64} {
  func.func @actor_kernel(%arg0: i32, %arg1: memref<512x32xf32, #tpu.memory_space<vmem>>, %arg2: memref<32x256xbf16, #tpu.memory_space<vmem>>, %arg3: memref<1x256xf32, #tpu.memory_space<vmem>>, %arg4: memref<256x128xbf16, #tpu.memory_space<vmem>>, %arg5: memref<1x128xf32, #tpu.memory_space<vmem>>, %arg6: memref<128x128xbf16, #tpu.memory_space<vmem>>, %arg7: memref<1x128xf32, #tpu.memory_space<vmem>>, %arg8: memref<512x128xbf16, #tpu.memory_space<vmem>>) attributes {dimension_semantics = [#tpu.dimension_semantics<parallel>], iteration_bounds = array<i64: 1>, scalar_prefetch = 0 : i64, scratch_operands = 0 : i64, tpu.core_type = #tpu.core_type<tc>, window_params = [{transform_indices = @transform_0, window_bounds = array<i64: 512, 32>}, {pipeline_mode = #tpu.pipeline_mode<synchronous>, transform_indices = @transform_1, window_bounds = array<i64: 32, 256>}, {pipeline_mode = #tpu.pipeline_mode<synchronous>, transform_indices = @transform_2, window_bounds = array<i64: 1, 256>}, {pipeline_mode = #tpu.pipeline_mode<synchronous>, transform_indices = @transform_3, window_bounds = array<i64: 256, 128>}, {pipeline_mode = #tpu.pipeline_mode<synchronous>, transform_indices = @transform_4, window_bounds = array<i64: 1, 128>}, {pipeline_mode = #tpu.pipeline_mode<synchronous>, transform_indices = @transform_5, window_bounds = array<i64: 128, 128>}, {pipeline_mode = #tpu.pipeline_mode<synchronous>, transform_indices = @transform_6, window_bounds = array<i64: 1, 128>}, {transform_indices = @transform_7, window_bounds = array<i64: 512, 128>}]} {
    %c0 = arith.constant 0 : index
    %c0_0 = arith.constant 0 : index
    %0 = vector.load %arg1[%c0, %c0_0] : memref<512x32xf32, #tpu.memory_space<vmem>>, vector<512x32xf32>
    %1 = arith.truncf %0 : vector<512x32xf32> to vector<512x32xbf16>
    %c0_1 = arith.constant 0 : index
    %c0_2 = arith.constant 0 : index
    %2 = vector.load %arg2[%c0_1, %c0_2] : memref<32x256xbf16, #tpu.memory_space<vmem>>, vector<32x256xbf16>
    %cst = arith.constant dense<0.000000e+00> : vector<512x256xf32>
    %3 = tpu.matmul %1, %2, %cst {dimension_numbers = #tpu.dot_dimension_numbers<[1], [0], [0], [1], [0, 0, 1, 1], [], []>} : vector<512x32xbf16>, vector<32x256xbf16>, vector<512x256xf32> -> vector<512x256xf32>
    %c0_3 = arith.constant 0 : index
    %c0_4 = arith.constant 0 : index
    %4 = vector.load %arg3[%c0_3, %c0_4] : memref<1x256xf32, #tpu.memory_space<vmem>>, vector<1x256xf32>
    %5 = vector.broadcast %4 : vector<1x256xf32> to vector<512x256xf32>
    %6 = arith.addf %3, %5 : vector<512x256xf32>
    %cst_5 = arith.constant 0.000000e+00 : f32
    %7 = vector.broadcast %cst_5 : f32 to vector<512x256xf32>
    %8 = arith.maximumf %6, %7 : vector<512x256xf32>
    %9 = arith.truncf %8 : vector<512x256xf32> to vector<512x256xbf16>
    %c0_6 = arith.constant 0 : index
    %c0_7 = arith.constant 0 : index
    %10 = vector.load %arg4[%c0_6, %c0_7] : memref<256x128xbf16, #tpu.memory_space<vmem>>, vector<256x128xbf16>
    %cst_8 = arith.constant dense<0.000000e+00> : vector<512x128xf32>
    %11 = tpu.matmul %9, %10, %cst_8 {dimension_numbers = #tpu.dot_dimension_numbers<[1], [0], [0], [1], [0, 0, 1, 1], [], []>} : vector<512x256xbf16>, vector<256x128xbf16>, vector<512x128xf32> -> vector<512x128xf32>
    %c0_9 = arith.constant 0 : index
    %c0_10 = arith.constant 0 : index
    %12 = vector.load %arg5[%c0_9, %c0_10] : memref<1x128xf32, #tpu.memory_space<vmem>>, vector<1x128xf32>
    %13 = vector.broadcast %12 : vector<1x128xf32> to vector<512x128xf32>
    %14 = arith.addf %11, %13 : vector<512x128xf32>
    %cst_11 = arith.constant 0.000000e+00 : f32
    %15 = vector.broadcast %cst_11 : f32 to vector<512x128xf32>
    %16 = arith.maximumf %14, %15 : vector<512x128xf32>
    %17 = arith.truncf %16 : vector<512x128xf32> to vector<512x128xbf16>
    %c0_12 = arith.constant 0 : index
    %c0_13 = arith.constant 0 : index
    %18 = vector.load %arg6[%c0_12, %c0_13] : memref<128x128xbf16, #tpu.memory_space<vmem>>, vector<128x128xbf16>
    %cst_14 = arith.constant dense<0.000000e+00> : vector<512x128xf32>
    %19 = tpu.matmul %17, %18, %cst_14 {dimension_numbers = #tpu.dot_dimension_numbers<[1], [0], [0], [1], [0, 0, 1, 1], [], []>} : vector<512x128xbf16>, vector<128x128xbf16>, vector<512x128xf32> -> vector<512x128xf32>
    %c0_15 = arith.constant 0 : index
    %c0_16 = arith.constant 0 : index
    %20 = vector.load %arg7[%c0_15, %c0_16] : memref<1x128xf32, #tpu.memory_space<vmem>>, vector<1x128xf32>
    %21 = vector.broadcast %20 : vector<1x128xf32> to vector<512x128xf32>
    %22 = arith.addf %19, %21 : vector<512x128xf32>
    %23 = math.tanh %22 : vector<512x128xf32>
    %24 = arith.truncf %23 : vector<512x128xf32> to vector<512x128xbf16>
    %c0_17 = arith.constant 0 : index
    %c0_18 = arith.constant 0 : index
    %25 = vector.load %arg8[%c0_17, %c0_18] : memref<512x128xbf16, #tpu.memory_space<vmem>>, vector<512x128xbf16>
    tpu.vector_store %arg8[%c0_17, %c0_18], %24 {strides = array<i32>} : memref<512x128xbf16, #tpu.memory_space<vmem>>, vector<512x128xbf16>,
    return
  }
  func.func @transform_0(%arg0: i32) -> (i32, i32) {
    %c0_i32 = arith.constant 0 : i32
    %c0_i32_0 = arith.constant 0 : i32
    return %arg0, %c0_i32 : i32, i32
  }
  func.func @transform_1(%arg0: i32) -> (i32, i32) {
    %c0_i32 = arith.constant 0 : i32
    %c0_i32_0 = arith.constant 0 : i32
    %c0_i32_1 = arith.constant 0 : i32
    return %c0_i32, %c0_i32_0 : i32, i32
  }
  func.func @transform_2(%arg0: i32) -> (i32, i32) {
    %c0_i32 = arith.constant 0 : i32
    %c0_i32_0 = arith.constant 0 : i32
    %c0_i32_1 = arith.constant 0 : i32
    return %c0_i32, %c0_i32_0 : i32, i32
  }
  func.func @transform_3(%arg0: i32) -> (i32, i32) {
    %c0_i32 = arith.constant 0 : i32
    %c0_i32_0 = arith.constant 0 : i32
    %c0_i32_1 = arith.constant 0 : i32
    return %c0_i32, %c0_i32_0 : i32, i32
  }
  func.func @transform_4(%arg0: i32) -> (i32, i32) {
    %c0_i32 = arith.constant 0 : i32
    %c0_i32_0 = arith.constant 0 : i32
    %c0_i32_1 = arith.constant 0 : i32
    return %c0_i32, %c0_i32_0 : i32, i32
  }
  func.func @transform_5(%arg0: i32) -> (i32, i32) {
    %c0_i32 = arith.constant 0 : i32
    %c0_i32_0 = arith.constant 0 : i32
    %c0_i32_1 = arith.constant 0 : i32
    return %c0_i32, %c0_i32_0 : i32, i32
  }
  func.func @transform_6(%arg0: i32) -> (i32, i32) {
    %c0_i32 = arith.constant 0 : i32
    %c0_i32_0 = arith.constant 0 : i32
    %c0_i32_1 = arith.constant 0 : i32
    return %c0_i32, %c0_i32_0 : i32, i32
  }
  func.func @transform_7(%arg0: i32) -> (i32, i32) {
    %c0_i32 = arith.constant 0 : i32
    %c0_i32_0 = arith.constant 0 : i32
    return %arg0, %c0_i32 : i32, i32
  }
}

</mosaic_0001>

<bundles_post_ra>
// kernel: _actor_forward_impl.1
= control target key start
LH: loop header
LB: loop body
LE: loop exit
PB: predicated region body
PF: predicated region fallthrough
CT: control target
= control target key end

     0   :  { %v2733_v1 = vmov 0   ;;  %vm159_vm0 = vcmask 261120   ;;  %s3547_s1 = inlined_call_operand.vmem [shape: bf16[32,256], index: 1, kind: input, shape index: {}]   ;;  %s3548_s0 = inlined_call_operand.vmem [shape: f32[512,32], index: 0, kind: input, shape index: {}]   ;;  %s3549_s3 = inlined_call_operand.vmem [shape: bf16[256,128], index: 3, kind: input, shape index: {}]   ;;  %s3550_s2 = inlined_call_operand.vmem [shape: f32[1,256], index: 2, kind: input, shape index: {}]   ;;  %s3551_s5 = inlined_call_operand.vmem [shape: bf16[128,128], index: 5, kind: input, shape index: {}]   ;;  %s3552_s4 = inlined_call_operand.vmem [shape: f32[1,128], index: 4, kind: input, shape index: {}]   ;;  %s3553_s6 = inlined_call_operand.vmem [shape: f32[1,128], index: 6, kind: input, shape index: {}]   ;;  %s3554_s7 = inlined_call_operand.vmem [shape: bf16[512,128], index: 7, kind: output, shape index: {}]  }
   0x1   :  { %v2575_v0 = vld [vmem:[%s3547_s1 + $0x4] ss:$8 sps:$4 sm:$0xff]   ;;  %288 = vmatprep.mubr.bf16.mxu0 %v2733_v1  ;;  %528 = vmatprep.mubr.bf16.mxu1 %v2733_v1  ;;  %v2577_v2 = vld [vmem:[%s3547_s1] ss:$8 sps:$4 sm:$0xff]   ;;  %v2578_v3 = vld [vmem:[%s3547_s1 + $0x14] ss:$8 sps:$4 sm:$0xff]  }
   0x2   :  { %256 = vmatprep.subr.bf16.mxu0 %v2575_v0  ;;  %2570 = vmatprep.subr.bf16.mxu1 %v2575_v0  ;;  %v2580_v4 = vld [vmem:[%s3547_s1 + $0x10] ss:$8 sps:$4 sm:$0xff]   ;;  %v27_v5 = vld [vmem:[%s3548_s0] sm:$0xff]  ;;  %v28_v6 = vld [vmem:[%s3548_s0 + $0x8] sm:$0xff] }
   0x3   :  { %257 = vmatpush1.bf16.msra.mxu0 %v2577_v2  ;;  %2572 = vmatpush1.bf16.msra.mxu1 %v2577_v2  ;;  %v91_v7 = vpack.c.bf16 %v28_v6, %v27_v5  ;;  %v29_v8 = vld [vmem:[%s3548_s0 + $0x10] sm:$0xff]  ;;  %v30_v9 = vld [vmem:[%s3548_s0 + $0x18] sm:$0xff]  ;;  %v31_v11 = vld [vmem:[%s3548_s0 + $0x20] sm:$0xff] }
   0x4   :  { %258 = vmatprep.subr.bf16.mxu0 %v2578_v3  ;;  %2571 = vmatprep.subr.bf16.mxu1 %v2578_v3  ;;  %v92_v10 = vpack.c.bf16 %v30_v9, %v29_v8  ;;  %v32_v12 = vld [vmem:[%s3548_s0 + $0x28] sm:$0xff]  ;;  %v33_v14 = vld [vmem:[%s3548_s0 + $0x30] sm:$0xff]  ;;  %v34_v15 = vld [vmem:[%s3548_s0 + $0x38] sm:$0xff] }
   0x5   :  { %v93_v13 = vpack.c.bf16 %v32_v12, %v31_v11  ;;  %v94_v16 = vpack.c.bf16 %v34_v15, %v33_v14  ;;  %v35_v17 = vld [vmem:[%s3548_s0 + $0x40] sm:$0xff]  ;;  %v36_v18 = vld [vmem:[%s3548_s0 + $0x48] sm:$0xff]  ;;  %v77_v25 = vld [vmem:[%s3548_s0 + $0x190] sm:$0xff] }
   0x6   :  { %v75_v19 = vld [vmem:[%s3548_s0 + $0x180] sm:$0xff]  ;;  %v76_v20 = vld [vmem:[%s3548_s0 + $0x188] sm:$0xff]  ;;  %v95_v23 = vpack.c.bf16 %v36_v18, %v35_v17  ;;  %v78_v26 = vld [vmem:[%s3548_s0 + $0x198] sm:$0xff] }
   0x7   :  { %259 = vmatpush1.bf16.msra.mxu0 %v2580_v4  ;;  %2573 = vmatpush1.bf16.msra.mxu1 %v2580_v4  ;;  %v115_v21 = vpack.c.bf16 %v76_v20, %v75_v19  ;;  %v2581_v22 = vld [vmem:[%s3549_s3] sm:$0xff]   ;;  %v2582_v24 = vld [vmem:[%s3549_s3 + $0x8] sm:$0xff]   ;;  %v37_v27 = vld [vmem:[%s3548_s0 + $0x50] sm:$0xff]  ;;  %v116_v29 = vpack.c.bf16 %v78_v26, %v77_v25 }
   0x8   :  { %936 = vmatprep.subr.bf16.mxu1 %v2733_v1  ;;  %v38_v28 = vld [vmem:[%s3548_s0 + $0x58] sm:$0xff]  ;;  %v2583_v30 = vld [vmem:[%s3549_s3 + $0x10] sm:$0xff]   ;;  %v79_v33 = vld [vmem:[%s3548_s0 + $0x1a0] sm:$0xff] }
   0x9   :  { %v96_v31 = vpack.c.bf16 %v38_v28, %v37_v27  ;;  %v2584_v32 = vld [vmem:[%s3549_s3 + $0x18] sm:$0xff]   ;;  %v80_v34 = vld [vmem:[%s3548_s0 + $0x1a8] sm:$0xff]  ;;  %v39_v35 = vld [vmem:[%s3548_s0 + $0x60] sm:$0xff] }
   0xa   :  { %2073 = vmatmul.mubr.msk.bf16.vlgmr.msra.gmra.mrb[0].mxu0 %vm159_vm0, %v91_v7  ;;  %2097 = vmatmul.mubr.msk.bf16.vlgmr.msra.gmra.mrb[0].mxu1 %vm159_vm0, %v115_v21  ;;  %v40_v36 = vld [vmem:[%s3548_s0 + $0x68] sm:$0xff]  ;;  %v117_v37 = vpack.c.bf16 %v80_v34, %v79_v33  ;;  %v2585_v38 = vld [vmem:[%s3549_s3 + $0x20] sm:$0xff]   ;;  %v81_v41 = vld [vmem:[%s3548_s0 + $0x1b0] sm:$0xff] }
   0xb   :  { %298 = vmatprep.mubr.bf16.mxu0 %v2733_v1  ;;  %937 = vmatpush1.bf16.msra.mxu1 %v2581_v22  ;;  %v97_v39 = vpack.c.bf16 %v40_v36, %v39_v35  ;;  %v2586_v40 = vld [vmem:[%s3549_s3 + $0x28] sm:$0xff]   ;;  %v82_v42 = vld [vmem:[%s3548_s0 + $0x1b8] sm:$0xff]  ;;  %v41_v43 = vld [vmem:[%s3548_s0 + $0x70] sm:$0xff] }
   0xc   :  { %538 = vmatprep.mubr.bf16.mxu1 %v2733_v1  ;;  %938 = vmatprep.subr.bf16.mxu1 %v2733_v1  ;;  %v42_v44 = vld [vmem:[%s3548_s0 + $0x78] sm:$0xff]  ;;  %v118_v45 = vpack.c.bf16 %v82_v42, %v81_v41  ;;  %v2587_v46 = vld [vmem:[%s3549_s3 + $0x30] sm:$0xff]   ;;  %v83_v49 = vld [vmem:[%s3548_s0 + $0x1c0] sm:$0xff] }
   0xd   :  { %v98_v47 = vpack.c.bf16 %v42_v44, %v41_v43  ;;  %v2588_v48 = vld [vmem:[%s3549_s3 + $0x38] sm:$0xff]   ;;  %v84_v50 = vld [vmem:[%s3548_s0 + $0x1c8] sm:$0xff]  ;;  %v43_v51 = vld [vmem:[%s3548_s0 + $0x80] sm:$0xff] }
   0xe   :  { %v44_v52 = vld [vmem:[%s3548_s0 + $0x88] sm:$0xff]  ;;  %v119_v53 = vpack.c.bf16 %v84_v50, %v83_v49  ;;  %v2589_v54 = vld [vmem:[%s3549_s3 + $0x40] sm:$0xff]   ;;  %v85_v56 = vld [vmem:[%s3548_s0 + $0x1d0] sm:$0xff] }
   0xf   :  { %939 = vmatpush1.bf16.msra.mxu1 %v2582_v24  ;;  %v99_v55 = vpack.c.bf16 %v44_v52, %v43_v51  ;;  %v86_v57 = vld [vmem:[%s3548_s0 + $0x1d8] sm:$0xff]  ;;  %v2590_v58 = vld [vmem:[%s3549_s3 + $0x48] sm:$0xff]   ;;  %v45_v60 = vld [vmem:[%s3548_s0 + $0x90] sm:$0xff] }
  0x10   :  { %940 = vmatprep.subr.bf16.mxu1 %v2733_v1  ;;  %v120_v59 = vpack.c.bf16 %v86_v57, %v85_v56  ;;  %v46_v61 = vld [vmem:[%s3548_s0 + $0x98] sm:$0xff]  ;;  %v2591_v62 = vld [vmem:[%s3549_s3 + $0x50] sm:$0xff]   ;;  %v87_v0 = vld [vmem:[%s3548_s0 + $0x1e0] sm:$0xff] }
  0x11   :  { %v100_v63 = vpack.c.bf16 %v46_v61, %v45_v60  ;;  %v88_v2 = vld [vmem:[%s3548_s0 + $0x1e8] sm:$0xff]  ;;  %v2592_v3 = vld [vmem:[%s3549_s3 + $0x58] sm:$0xff]   ;;  %v47_v5 = vld [vmem:[%s3548_s0 + $0xa0] sm:$0xff] }
  0x12   :  { %2074 = vmatmul.mubr.msk.bf16.gmra.mrb[4].mxu0 %vm159_vm0, %v92_v10  ;;  %2098 = vmatmul.mubr.msk.bf16.gmra.mrb[4].mxu1 %vm159_vm0, %v116_v29  ;;  %v121_v4 = vpack.c.bf16 %v88_v2, %v87_v0  ;;  %v48_v6 = vld [vmem:[%s3548_s0 + $0xa8] sm:$0xff]  ;;  %v2593_v7 = vld [vmem:[%s3549_s3 + $0x60] sm:$0xff]   ;;  %v89_v10 = vld [vmem:[%s3548_s0 + $0x1f0] sm:$0xff] }
  0x13   :  { %308 = vmatprep.mubr.bf16.mxu0 %v2733_v1  ;;  %548 = vmatprep.mubr.bf16.mxu1 %v2733_v1  ;;  %v101_v8 = vpack.c.bf16 %v48_v6, %v47_v5  ;;  %v2594_v9 = vld [vmem:[%s3549_s3 + $0x68] sm:$0xff]   ;;  %v90_v11 = vld [vmem:[%s3548_s0 + $0x1f8] sm:$0xff]  ;;  %v49_v12 = vld [vmem:[%s3548_s0 + $0xb0] sm:$0xff] }
  0x14   :  { %941 = vmatpush1.bf16.msra.mxu1 %v2583_v30  ;;  %v122_v14 = vpack.c.bf16 %v90_v11, %v89_v10  ;;  %v51_v17 = vld [vmem:[%s3548_s0 + $0xc0] sm:$0xff]  ;;  %v52_v18 = vld [vmem:[%s3548_s0 + $0xc8] sm:$0xff]  ;;  %v2596_v19 = vld [vmem:[%s3549_s3 + $0x78] sm:$0xff]  }
  0x15   :  { %942 = vmatprep.subr.bf16.mxu1 %v2733_v1  ;;  %v103_v20 = vpack.c.bf16 %v52_v18, %v51_v17  ;;  %v53_v21 = vld [vmem:[%s3548_s0 + $0xd0] sm:$0xff]  ;;  %v54_v22 = vld [vmem:[%s3548_s0 + $0xd8] sm:$0xff]  ;;  %v55_v24 = vld [vmem:[%s3548_s0 + $0xe0] sm:$0xff] }
  0x16   :  { %v56_v25 = vld [vmem:[%s3548_s0 + $0xe8] sm:$0xff]  ;;  %v57_v27 = vld [vmem:[%s3548_s0 + $0xf0] sm:$0xff]  ;;  %v58_v28 = vld [vmem:[%s3548_s0 + $0xf8] sm:$0xff] }
  0x17   :  { %v105_v26 = vpack.c.bf16 %v56_v25, %v55_v24  ;;  %v106_v29 = vpack.c.bf16 %v58_v28, %v57_v27  ;;  %v59_v30 = vld [vmem:[%s3548_s0 + $0x100] sm:$0xff]  ;;  %v61_v33 = vld [vmem:[%s3548_s0 + $0x110] sm:$0xff]  ;;  %v62_v34 = vld [vmem:[%s3548_s0 + $0x118] sm:$0xff] }
  0x18   :  { %943 = vmatpush1.bf16.msra.mxu1 %v2584_v32  ;;  %v108_v35 = vpack.c.bf16 %v62_v34, %v61_v33  ;;  %v63_v36 = vld [vmem:[%s3548_s0 + $0x120] sm:$0xff]  ;;  %v68_v43 = vld [vmem:[%s3548_s0 + $0x148] sm:$0xff]  ;;  %v73_v51 = vld [vmem:[%s3548_s0 + $0x170] sm:$0xff] }
  0x19   :  { %944 = vmatprep.subr.bf16.mxu1 %v2733_v1  ;;  %v67_v42 = vld [vmem:[%s3548_s0 + $0x140] sm:$0xff]  ;;  %v72_v49 = vld [vmem:[%s3548_s0 + $0x168] sm:$0xff]  ;;  %v74_v52 = vld [vmem:[%s3548_s0 + $0x178] sm:$0xff] }
  0x1a   :  { %2075 = vmatmul.mubr.msk.bf16.gmra.mrb[8].mxu0 %vm159_vm0, %v93_v13  ;;  %2099 = vmatmul.mubr.msk.bf16.gmra.mrb[8].mxu1 %vm159_vm0, %v117_v37  ;;  %v50_v13 = vld [vmem:[%s3548_s0 + $0xb8] sm:$0xff]  ;;  %v64_v37 = vld [vmem:[%s3548_s0 + $0x128] sm:$0xff]  ;;  %v111_v44 = vpack.c.bf16 %v68_v43, %v67_v42  ;;  %v127_v57 = vld [vmem:[%s3550_s2] sm:$0x3] }
  0x1b   :  { %318 = vmatprep.mubr.bf16.mxu0 %v2733_v1  ;;  %558 = vmatprep.mubr.bf16.mxu1 %v2733_v1  ;;  %v102_v15 = vpack.c.bf16 %v50_v13, %v49_v12 }
  0x1c   :  { %945 = vmatpush1.bf16.msra.mxu1 %v2585_v38  ;;  %v109_v38 = vpack.c.bf16 %v64_v37, %v63_v36 }
  0x1d   :  { %946 = vmatprep.subr.bf16.mxu1 %v2733_v1 }
  0x20   :  { %947 = vmatpush1.bf16.msra.mxu1 %v2586_v40  ;;  %v66_v40 = vld [vmem:[%s3548_s0 + $0x138] sm:$0xff] }
  0x21   :  { %948 = vmatprep.subr.bf16.mxu1 %v2733_v1 }
  0x22   :  { %2076 = vmatmul.mubr.msk.bf16.gmra.mrb[12].mxu0 %vm159_vm0, %v94_v16  ;;  %2100 = vmatmul.mubr.msk.bf16.gmra.mrb[12].mxu1 %vm159_vm0, %v118_v45  ;;  %v2595_v16 = vld [vmem:[%s3549_s3 + $0x70] sm:$0xff]  }
  0x23   :  { %328 = vmatprep.mubr.bf16.mxu0 %v2733_v1  ;;  %568 = vmatprep.mubr.bf16.mxu1 %v2733_v1  ;;  %v69_v45 = vld [vmem:[%s3548_s0 + $0x150] sm:$0xff] }
  0x24   :  { %949 = vmatpush1.bf16.msra.mxu1 %v2587_v46  ;;  %v70_v46 = vld [vmem:[%s3548_s0 + $0x158] sm:$0xff] }
  0x25   :  { %950 = vmatprep.subr.bf16.mxu1 %v2733_v1 }
  0x28   :  { %951 = vmatpush1.bf16.msra.mxu1 %v2588_v48  ;;  %v71_v48 = vld [vmem:[%s3548_s0 + $0x160] sm:$0xff] }
  0x29   :  { %952 = vmatprep.subr.bf16.mxu1 %v2733_v1  ;;  %v113_v50 = vpack.c.bf16 %v72_v49, %v71_v48 }
  0x2a   :  { %2077 = vmatmul.mubr.msk.bf16.gmra.mrb[16].mxu0 %vm159_vm0, %v95_v23  ;;  %2101 = vmatmul.mubr.msk.bf16.gmra.mrb[16].mxu1 %vm159_vm0, %v119_v53  ;;  %v104_v23 = vpack.c.bf16 %v54_v22, %v53_v21  ;;  %v114_v53 = vpack.c.bf16 %v74_v52, %v73_v51 }
  0x2b   :  { %338 = vmatprep.mubr.bf16.mxu0 %v2733_v1  ;;  %578 = vmatprep.mubr.bf16.mxu1 %v2733_v1 }
  0x2c   :  { %953 = vmatpush1.bf16.msra.mxu1 %v2589_v54  ;;  %v129_v54 = vlaneseq }
  0x2d   :  { %954 = vmatprep.subr.bf16.mxu1 %v2733_v1 }
  0x30   :  { %955 = vmatpush1.bf16.msra.mxu1 %v2590_v58 }
  0x31   :  { %956 = vmatprep.subr.bf16.mxu1 %v2733_v1 }
  0x32   :  { %2078 = vmatmul.mubr.msk.bf16.gmra.mrb[20].mxu0 %vm159_vm0, %v96_v31  ;;  %2102 = vmatmul.mubr.msk.bf16.gmra.mrb[20].mxu1 %vm159_vm0, %v120_v59  ;;  %v60_v31 = vld [vmem:[%s3548_s0 + $0x108] sm:$0xff] }
  0x33   :  { %348 = vmatprep.mubr.bf16.mxu0 %v2733_v1  ;;  %588 = vmatprep.mubr.bf16.mxu1 %v2733_v1  ;;  %v107_v32 = vpack.c.bf16 %v60_v31, %v59_v30 }
  0x34   :  { %957 = vmatpush1.bf16.msra.mxu1 %v2591_v62 }
  0x35   :  { %958 = vmatprep.subr.bf16.mxu1 %v2733_v1 }
  0x38   :  { %959 = vmatpush1.bf16.msra.mxu1 %v2592_v3 }
  0x39   :  { %960 = vmatprep.subr.bf16.mxu1 %v2733_v1 }
  0x3a   :  { %2079 = vmatmul.mubr.msk.bf16.gmra.mrb[24].mxu0 %vm159_vm0, %v97_v39  ;;  %2103 = vmatmul.mubr.msk.bf16.gmra.mrb[24].mxu1 %vm159_vm0, %v121_v4  ;;  %v65_v39 = vld [vmem:[%s3548_s0 + $0x130] sm:$0xff] }
  0x3b   :  { %358 = vmatprep.mubr.bf16.mxu0 %v2733_v1  ;;  %598 = vmatprep.mubr.bf16.mxu1 %v2733_v1  ;;  %v110_v41 = vpack.c.bf16 %v66_v40, %v65_v39 }
  0x3c   :  { %961 = vmatpush1.bf16.msra.mxu1 %v2593_v7 }
  0x3d   :  { %962 = vmatprep.subr.bf16.mxu1 %v2733_v1 }
  0x40   :  { %963 = vmatpush1.bf16.msra.mxu1 %v2594_v9 }
  0x41   :  { %964 = vmatprep.subr.bf16.mxu1 %v2733_v1 }
  0x42   :  { %2080 = vmatmul.mubr.msk.bf16.gmra.mrb[28].mxu0 %vm159_vm0, %v98_v47  ;;  %2104 = vmatmul.mubr.msk.bf16.gmra.mrb[28].mxu1 %vm159_vm0, %v122_v14  ;;  %v112_v47 = vpack.c.bf16 %v70_v46, %v69_v45 }
  0x43   :  { %368 = vmatprep.mubr.bf16.mxu0 %v2733_v1 }
  0x44   :  { %965 = vmatpush1.bf16.msra.mxu1 %v2595_v16 }
  0x45   :  { %966 = vmatprep.subr.bf16.mxu1 %v2733_v1 }
  0x48   :  { %967 = vmatpush1.bf16.msra.mxu1 %v2596_v19 }
  0x4a   :  { %2081 = vmatmul.mubr.msk.bf16.gmra.mrb[32].mxu0 %vm159_vm0, %v99_v55  ;;  %v130_v55 = vshrl.u32 %v129_v54, 7 }
  0x4b   :  { %378 = vmatprep.mubr.bf16.mxu0 %v2733_v1 }
  0x4c   :  { %v131_v56 = vsub.s32 0, %v130_v55  ;;  %v135_v58 = vsub.s32 1, %v130_v55 }
  0x4e   :  { %v3111_v59 = vrot.slane %v127_v57, %v135_v58 }
  0x52   :  { %2082 = vmatmul.mubr.msk.bf16.gmra.mrb[36].mxu0 %vm159_vm0, %v100_v63 }
  0x53   :  { %388 = vmatprep.mubr.bf16.mxu0 %v2733_v1 }
  0x5a   :  { %2083 = vmatmul.mubr.msk.bf16.gmra.mrb[40].mxu0 %vm159_vm0, %v101_v8 }
  0x5b   :  { %398 = vmatprep.mubr.bf16.mxu0 %v2733_v1 }
  0x62   :  { %2084 = vmatmul.mubr.msk.bf16.gmra.mrb[44].mxu0 %vm159_vm0, %v102_v15 }
  0x63   :  { %408 = vmatprep.mubr.bf16.mxu0 %v2733_v1 }
  0x6a   :  { %2085 = vmatmul.mubr.msk.bf16.gmra.mrb[48].mxu0 %vm159_vm0, %v103_v20 }
  0x6b   :  { %418 = vmatprep.mubr.bf16.mxu0 %v2733_v1 }
  0x72   :  { %2086 = vmatmul.mubr.msk.bf16.gmra.mrb[52].mxu0 %vm159_vm0, %v104_v23 }
  0x73   :  { %428 = vmatprep.mubr.bf16.mxu0 %v2733_v1 }
  0x7a   :  { %2087 = vmatmul.mubr.msk.bf16.gmra.mrb[56].mxu0 %vm159_vm0, %v105_v26 }
  0x7b   :  { %438 = vmatprep.mubr.bf16.mxu0 %v2733_v1 }
  0x82   :  { %2088 = vmatmul.mubr.msk.bf16.gmra.mrb[60].mxu0 %vm159_vm0, %v106_v29 }
  0x83   :  { %448 = vmatprep.mubr.bf16.mxu0 %v2733_v1 }
  0x8a   :  { %2089 = vmatmul.mubr.msk.bf16.gmra.mrb[64].mxu0 %vm159_vm0, %v107_v32 }
  0x8b   :  { %458 = vmatprep.mubr.bf16.mxu0 %v2733_v1 }
  0x92   :  { %2090 = vmatmul.mubr.msk.bf16.gmra.mrb[68].mxu0 %vm159_vm0, %v108_v35 }
  0x93   :  { %468 = vmatprep.mubr.bf16.mxu0 %v2733_v1 }
  0x9a   :  { %2091 = vmatmul.mubr.msk.bf16.gmra.mrb[72].mxu0 %vm159_vm0, %v109_v38 }
  0x9b   :  { %478 = vmatprep.mubr.bf16.mxu0 %v2733_v1 }
  0xa2   :  { %2092 = vmatmul.mubr.msk.bf16.gmra.mrb[76].mxu0 %vm159_vm0, %v110_v41 }
  0xa3   :  { %488 = vmatprep.mubr.bf16.mxu0 %v2733_v1 }
  0xaa   :  { %2093 = vmatmul.mubr.msk.bf16.gmra.mrb[80].mxu0 %vm159_vm0, %v111_v44 }
  0xab   :  { %498 = vmatprep.mubr.bf16.mxu0 %v2733_v1 }
  0xb2   :  { %2094 = vmatmul.mubr.msk.bf16.gmra.mrb[84].mxu0 %vm159_vm0, %v112_v47 }
  0xb3   :  { %508 = vmatprep.mubr.bf16.mxu0 %v2733_v1 }
  0xba   :  { %2095 = vmatmul.mubr.msk.bf16.gmra.mrb[88].mxu0 %vm159_vm0, %v113_v50 }
  0xbb   :  { %518 = vmatprep.mubr.bf16.mxu0 %v2733_v1  ;;  %v3109_v1 = vrot.slane %v127_v57, %v131_v56 }
  0xc2   :  { %2096 = vmatmul.mubr.msk.bf16.gmra.mrb[92].mxu0 %vm159_vm0, %v114_v53 }
  0xdd   :  { %v290_v60 = vpop.f32.mrb[0].mxu0  ;;  %v530_v46 = vpop.f32.mrb[0].mxu1 }
  0xde   :  { %v291_v61 = vadd.f32 %v290_v60, %v3109_v1  ;;  %v292_v62 = vpop.f32.mrb[1].mxu0  ;;  %v532_v48 = vpop.f32.mrb[1].mxu1  ;;  %v531_v56 = vadd.f32 %v530_v46, %v3109_v1 }
  0xdf   :  { %v293_v63 = vadd.f32 %v292_v62, %v3111_v59  ;;  %v294_v0 = vpop.f32.mrb[2].mxu0  ;;  %v534_v51 = vpop.f32.mrb[2].mxu1  ;;  %v533_v57 = vadd.f32 %v532_v48, %v3111_v59 }
  0xe0   :  { %v295_v2 = vadd.f32 %v294_v0, %v3109_v1  ;;  %v296_v3 = vpop.f32.mrb[3].mxu0  ;;  %v609_v5 = vmax.f32 %v291_v61, 0.0  ;;  %v536_v54 = vpop.f32.mrb[3].mxu1  ;;  %v535_v58 = vadd.f32 %v534_v51, %v3109_v1 }
  0xe1   :  { %v297_v4 = vadd.f32 %v296_v3, %v3111_v59  ;;  %v610_v7 = vmax.f32 %v293_v63, 0.0  ;;  %v537_v62 = vadd.f32 %v536_v54, %v3111_v59  ;;  %v706_v3 = vmax.f32 %v533_v57, 0.0 }
  0xe2   :  { %v611_v6 = vmax.f32 %v295_v2, 0.0  ;;  %v705_v2 = vmax.f32 %v531_v56, 0.0 }
  0xe3   :  { %v612_v8 = vmax.f32 %v297_v4, 0.0  ;;  %v707_v4 = vmax.f32 %v535_v58, 0.0 }
  0xe4   :  { %v737_v9 = vpack.c.bf16 %v611_v6, %v609_v5 }
  0xe5   :  { %v738_v10 = vpack.c.bf16 %v612_v8, %v610_v7  ;;  %v300_v11 = vpop.f32.mrb[4].mxu0  ;;  %v708_v7 = vmax.f32 %v537_v62, 0.0 }
  0xe6   :  { %v301_v12 = vadd.f32 %v300_v11, %v3109_v1  ;;  %v302_v13 = vpop.f32.mrb[5].mxu0  ;;  %v540_v11 = vpop.f32.mrb[4].mxu1 }
  0xe7   :  { %v303_v14 = vadd.f32 %v302_v13, %v3111_v59  ;;  %v304_v15 = vpop.f32.mrb[6].mxu0  ;;  %968 = vmatprep.mubr.bf16.mxu1 %v738_v10  ;;  %v3136_v10 = vpack.c.bf16 %v707_v4, %v705_v2  ;;  %v3139_v13 = vpack.c.bf16 %v708_v7, %v706_v3 }
  0xe8   :  { %v305_v16 = vadd.f32 %v304_v15, %v3109_v1  ;;  %v306_v17 = vpop.f32.mrb[7].mxu0  ;;  %969 = vmatmul.mubr.bf16.vlgmr.msra.gmra.mrb[32].mxu1 %v737_v9  ;;  %v613_v19 = vmax.f32 %v301_v12, 0.0 }
  0xe9   :  { %v307_v18 = vadd.f32 %v306_v17, %v3111_v59  ;;  %v614_v21 = vmax.f32 %v303_v14, 0.0  ;;  %v542_v14 = vpop.f32.mrb[5].mxu1 }
  0xea   :  { %v615_v20 = vmax.f32 %v305_v16, 0.0  ;;  %v544_v17 = vpop.f32.mrb[6].mxu1 }
  0xeb   :  { %v616_v22 = vmax.f32 %v307_v18, 0.0 }
  0xec   :  { %v739_v23 = vpack.c.bf16 %v615_v20, %v613_v19  ;;  %v546_v20 = vpop.f32.mrb[7].mxu1 }
  0xed   :  { %v740_v24 = vpack.c.bf16 %v616_v22, %v614_v21  ;;  %v310_v25 = vpop.f32.mrb[8].mxu0  ;;  %v541_v22 = vadd.f32 %v540_v11, %v3109_v1 }
  0xee   :  { %v311_v26 = vadd.f32 %v310_v25, %v3109_v1  ;;  %v312_v27 = vpop.f32.mrb[9].mxu0 }
  0xef   :  { %v313_v28 = vadd.f32 %v312_v27, %v3111_v59  ;;  %v314_v29 = vpop.f32.mrb[10].mxu0  ;;  %976 = vmatprep.mubr.bf16.mxu1 %v740_v24  ;;  %v545_v24 = vadd.f32 %v544_v17, %v3109_v1  ;;  %v547_v27 = vadd.f32 %v546_v20, %v3111_v59 }
  0xf0   :  { %v315_v30 = vadd.f32 %v314_v29, %v3109_v1  ;;  %v316_v31 = vpop.f32.mrb[11].mxu0  ;;  %977 = vmatmul.mubr.bf16.gmra.mrb[36].mxu1 %v739_v23  ;;  %v617_v33 = vmax.f32 %v311_v26, 0.0  ;;  %v543_v23 = vadd.f32 %v542_v14, %v3111_v59 }
  0xf1   :  { %v317_v32 = vadd.f32 %v316_v31, %v3111_v59  ;;  %v618_v35 = vmax.f32 %v313_v28, 0.0 }
  0xf2   :  { %v619_v34 = vmax.f32 %v315_v30, 0.0  ;;  %v709_v30 = vmax.f32 %v541_v22, 0.0  ;;  %v710_v31 = vmax.f32 %v543_v23, 0.0 }
  0xf3   :  { %v620_v36 = vmax.f32 %v317_v32, 0.0  ;;  %v711_v32 = vmax.f32 %v545_v24, 0.0 }
  0xf4   :  { %v741_v37 = vpack.c.bf16 %v619_v34, %v617_v33 }
  0xf5   :  { %v742_v38 = vpack.c.bf16 %v620_v36, %v618_v35  ;;  %v320_v39 = vpop.f32.mrb[12].mxu0  ;;  %v712_v35 = vmax.f32 %v547_v27, 0.0  ;;  %v2597_v36 = vld [vmem:[%s3551_s5] sm:$0xff]  }
  0xf6   :  { %v321_v40 = vadd.f32 %v320_v39, %v3109_v1  ;;  %v322_v41 = vpop.f32.mrb[13].mxu0  ;;  %2490 = vmatprep.subr.bf16.mxu0 %v2597_v36 }
  0xf7   :  { %v323_v42 = vadd.f32 %v322_v41, %v3111_v59  ;;  %v324_v43 = vpop.f32.mrb[14].mxu0  ;;  %984 = vmatprep.mubr.bf16.mxu1 %v742_v38  ;;  %v550_v41 = vpop.f32.mrb[8].mxu1  ;;  %2491 = vmatpush3.bf16.msra.mxu0 %v2597_v36 }
  0xf8   :  { %v325_v44 = vadd.f32 %v324_v43, %v3109_v1  ;;  %v326_v45 = vpop.f32.mrb[15].mxu0  ;;  %985 = vmatmul.mubr.bf16.gmra.mrb[40].mxu1 %v741_v37  ;;  %v621_v49 = vmax.f32 %v321_v40, 0.0  ;;  %v3151_v40 = vpack.c.bf16 %v711_v32, %v709_v30  ;;  %v551_v51 = vadd.f32 %v550_v41, %v3109_v1 }
  0xf9   :  { %v327_v47 = vadd.f32 %v326_v45, %v3111_v59  ;;  %v622_v52 = vmax.f32 %v323_v42, 0.0  ;;  %v552_v45 = vpop.f32.mrb[9].mxu1 }
  0xfa   :  { %v623_v50 = vmax.f32 %v325_v44, 0.0  ;;  %v3154_v44 = vpack.c.bf16 %v712_v35, %v710_v31 }
  0xfb   :  { %v624_v53 = vmax.f32 %v327_v47, 0.0  ;;  %v554_v47 = vpop.f32.mrb[10].mxu1 }
  0xfc   :  { %v743_v55 = vpack.c.bf16 %v623_v50, %v621_v49  ;;  %v556_v49 = vpop.f32.mrb[11].mxu1 }
  0xfd   :  { %v744_v60 = vpack.c.bf16 %v624_v53, %v622_v52  ;;  %v330_v61 = vpop.f32.mrb[16].mxu0  ;;  %v553_v52 = vadd.f32 %v552_v45, %v3111_v59  ;;  %v555_v53 = vadd.f32 %v554_v47, %v3109_v1  ;;  %v557_v56 = vadd.f32 %v556_v49, %v3111_v59 }
  0xfe   :  { %v331_v63 = vadd.f32 %v330_v61, %v3109_v1  ;;  %v332_v0 = vpop.f32.mrb[17].mxu0 }
  0xff   :  { %v333_v5 = vadd.f32 %v332_v0, %v3111_v59  ;;  %v334_v6 = vpop.f32.mrb[18].mxu0  ;;  %992 = vmatprep.mubr.bf16.mxu1 %v744_v60  ;;  %v713_v60 = vmax.f32 %v551_v51, 0.0  ;;  %v714_v61 = vmax.f32 %v553_v52, 0.0  ;;  %v715_v62 = vmax.f32 %v555_v53, 0.0 }
 0x100   :  { %v335_v8 = vadd.f32 %v334_v6, %v3109_v1  ;;  %v336_v9 = vpop.f32.mrb[19].mxu0  ;;  %993 = vmatmul.mubr.bf16.gmra.mrb[44].mxu1 %v743_v55  ;;  %v625_v15 = vmax.f32 %v331_v63, 0.0  ;;  %v716_v2 = vmax.f32 %v557_v56, 0.0  ;;  %v560_v6 = vpop.f32.mrb[12].mxu1 }
 0x101   :  { %v337_v12 = vadd.f32 %v336_v9, %v3111_v59  ;;  %v626_v18 = vmax.f32 %v333_v5, 0.0  ;;  %v3163_v5 = vpack.c.bf16 %v715_v62, %v713_v60  ;;  %v562_v9 = vpop.f32.mrb[13].mxu1 }
 0x102   :  { %v627_v16 = vmax.f32 %v335_v8, 0.0  ;;  %v3166_v8 = vpack.c.bf16 %v716_v2, %v714_v61  ;;  %v564_v14 = vpop.f32.mrb[14].mxu1  ;;  %v563_v20 = vadd.f32 %v562_v9, %v3111_v59 }
 0x103   :  { %v628_v19 = vmax.f32 %v337_v12, 0.0  ;;  %v566_v17 = vpop.f32.mrb[15].mxu1 }
 0x104   :  { %v745_v21 = vpack.c.bf16 %v627_v16, %v625_v15  ;;  %v567_v24 = vadd.f32 %v566_v17, %v3111_v59  ;;  %v570_v36 = vpop.f32.mrb[16].mxu1 }
 0x105   :  { %v746_v25 = vpack.c.bf16 %v628_v19, %v626_v18  ;;  %v340_v26 = vpop.f32.mrb[20].mxu0  ;;  %v561_v19 = vadd.f32 %v560_v6, %v3109_v1  ;;  %v571_v49 = vadd.f32 %v570_v36, %v3109_v1 }
 0x106   :  { %v341_v28 = vadd.f32 %v340_v26, %v3109_v1  ;;  %v342_v29 = vpop.f32.mrb[21].mxu0  ;;  %v720_v32 = vmax.f32 %v567_v24, 0.0 }
 0x107   :  { %v343_v33 = vadd.f32 %v342_v29, %v3111_v59  ;;  %v344_v34 = vpop.f32.mrb[22].mxu0  ;;  %1000 = vmatprep.mubr.bf16.mxu1 %v746_v25  ;;  %v717_v27 = vmax.f32 %v561_v19, 0.0 }
 0x108   :  { %v629_v37 = vmax.f32 %v341_v28, 0.0  ;;  %v345_v38 = vadd.f32 %v344_v34, %v3109_v1  ;;  %v346_v39 = vpop.f32.mrb[23].mxu0  ;;  %1001 = vmatmul.mubr.bf16.gmra.mrb[48].mxu1 %v745_v21  ;;  %v565_v21 = vadd.f32 %v564_v14, %v3109_v1  ;;  %v718_v28 = vmax.f32 %v563_v20, 0.0 }
 0x109   :  { %v630_v42 = vmax.f32 %v343_v33, 0.0  ;;  %v347_v43 = vadd.f32 %v346_v39, %v3111_v59  ;;  %v572_v39 = vpop.f32.mrb[17].mxu1 }
 0x10a   :  { %v631_v46 = vmax.f32 %v345_v38, 0.0  ;;  %v719_v29 = vmax.f32 %v565_v21, 0.0  ;;  %v3178_v38 = vpack.c.bf16 %v720_v32, %v718_v28 }
 0x10b   :  { %v632_v48 = vmax.f32 %v347_v43, 0.0  ;;  %v574_v43 = vpop.f32.mrb[18].mxu1 }
 0x10c   :  { %v747_v50 = vpack.c.bf16 %v631_v46, %v629_v37  ;;  %v3175_v35 = vpack.c.bf16 %v719_v29, %v717_v27  ;;  %v576_v47 = vpop.f32.mrb[19].mxu1  ;;  %v575_v51 = vadd.f32 %v574_v43, %v3109_v1 }
 0x10d   :  { %v748_v54 = vpack.c.bf16 %v632_v48, %v630_v42  ;;  %v350_v55 = vpop.f32.mrb[24].mxu0  ;;  %v580_v6 = vpop.f32.mrb[20].mxu1 }
 0x10e   :  { %v351_v57 = vadd.f32 %v350_v55, %v3109_v1  ;;  %v352_v58 = vpop.f32.mrb[25].mxu0  ;;  %v2598_v55 = vld [vmem:[%s3551_s5 + $0x8] sm:$0xff]   ;;  %v723_v61 = vmax.f32 %v575_v51, 0.0 }
 0x10f   :  { %v353_v63 = vadd.f32 %v352_v58, %v3111_v59  ;;  %v354_v0 = vpop.f32.mrb[26].mxu0  ;;  %1008 = vmatprep.mubr.bf16.mxu1 %v748_v54  ;;  %v577_v54 = vadd.f32 %v576_v47, %v3111_v59  ;;  %v721_v58 = vmax.f32 %v571_v49, 0.0  ;;  %2492 = vmatprep.subr.bf16.mxu0 %v2598_v55 }
 0x110   :  { %v355_v3 = vadd.f32 %v354_v0, %v3109_v1  ;;  %v356_v4 = vpop.f32.mrb[27].mxu0  ;;  %1009 = vmatmul.mubr.bf16.gmra.mrb[52].mxu1 %v747_v50  ;;  %v633_v11 = vmax.f32 %v351_v57, 0.0  ;;  %v573_v50 = vadd.f32 %v572_v39, %v3111_v59  ;;  %2493 = vmatpush3.bf16.msra.mxu0 %v2598_v55 }
 0x111   :  { %v357_v7 = vadd.f32 %v356_v4, %v3111_v59  ;;  %v634_v15 = vmax.f32 %v353_v63, 0.0  ;;  %v724_v0 = vmax.f32 %v577_v54, 0.0  ;;  %v3190_v4 = vpack.c.bf16 %v723_v61, %v721_v58 }
 0x112   :  { %v635_v12 = vmax.f32 %v355_v3, 0.0  ;;  %v722_v60 = vmax.f32 %v573_v50, 0.0 }
 0x113   :  { %v636_v16 = vmax.f32 %v357_v7, 0.0 }
 0x114   :  { %v749_v18 = vpack.c.bf16 %v635_v12, %v633_v11  ;;  %v3193_v9 = vpack.c.bf16 %v724_v0, %v722_v60  ;;  %v581_v11 = vadd.f32 %v580_v6, %v3109_v1  ;;  %v582_v12 = vpop.f32.mrb[21].mxu1 }
 0x115   :  { %v750_v22 = vpack.c.bf16 %v636_v16, %v634_v15  ;;  %v360_v23 = vpop.f32.mrb[28].mxu0  ;;  %v583_v16 = vadd.f32 %v582_v12, %v3111_v59  ;;  %v584_v17 = vpop.f32.mrb[22].mxu1 }
 0x116   :  { %v361_v25 = vadd.f32 %v360_v23, %v3109_v1  ;;  %v362_v26 = vpop.f32.mrb[29].mxu0  ;;  %v725_v20 = vmax.f32 %v581_v11, 0.0  ;;  %v585_v21 = vadd.f32 %v584_v17, %v3109_v1 }
 0x117   :  { %v363_v30 = vadd.f32 %v362_v26, %v3111_v59  ;;  %v364_v31 = vpop.f32.mrb[30].mxu0  ;;  %1016 = vmatprep.mubr.bf16.mxu1 %v750_v22  ;;  %v586_v22 = vpop.f32.mrb[23].mxu1  ;;  %v726_v24 = vmax.f32 %v583_v16, 0.0 }
 0x118   :  { %v365_v33 = vadd.f32 %v364_v31, %v3109_v1  ;;  %v366_v34 = vpop.f32.mrb[31].mxu0  ;;  %1017 = vmatmul.mubr.bf16.gmra.mrb[56].mxu1 %v749_v18  ;;  %v637_v41 = vmax.f32 %v361_v25, 0.0  ;;  %v587_v25 = vadd.f32 %v586_v22, %v3111_v59  ;;  %v727_v28 = vmax.f32 %v585_v21, 0.0 }
 0x119   :  { %v367_v37 = vadd.f32 %v366_v34, %v3111_v59  ;;  %v638_v45 = vmax.f32 %v363_v30, 0.0 }
 0x11a   :  { %v639_v42 = vmax.f32 %v365_v33, 0.0  ;;  %v728_v31 = vmax.f32 %v587_v25, 0.0  ;;  %v3201_v34 = vpack.c.bf16 %v727_v28, %v725_v20 }
 0x11b   :  { %v640_v46 = vmax.f32 %v367_v37, 0.0 }
 0x11c   :  { %v751_v48 = vpack.c.bf16 %v639_v42, %v637_v41  ;;  %v3204_v39 = vpack.c.bf16 %v728_v31, %v726_v24  ;;  %v590_v41 = vpop.f32.mrb[24].mxu1 }
 0x11d   :  { %v752_v52 = vpack.c.bf16 %v640_v46, %v638_v45  ;;  %v370_v53 = vpop.f32.mrb[32].mxu0  ;;  %v591_v43 = vadd.f32 %v590_v41, %v3109_v1  ;;  %v592_v45 = vpop.f32.mrb[25].mxu1 }
 0x11e   :  { %v371_v56 = vadd.f32 %v370_v53, %v3109_v1  ;;  %v372_v57 = vpop.f32.mrb[33].mxu0  ;;  %v594_v49 = vpop.f32.mrb[26].mxu1 }
 0x11f   :  { %v373_v62 = vadd.f32 %v372_v57, %v3111_v59  ;;  %v374_v63 = vpop.f32.mrb[34].mxu0  ;;  %1024 = vmatprep.mubr.bf16.mxu1 %v752_v52  ;;  %v729_v52 = vmax.f32 %v591_v43, 0.0  ;;  %v595_v53 = vadd.f32 %v594_v49, %v3109_v1  ;;  %v596_v54 = vpop.f32.mrb[27].mxu1 }
 0x120   :  { %v375_v2 = vadd.f32 %v374_v63, %v3109_v1  ;;  %v376_v3 = vpop.f32.mrb[35].mxu0  ;;  %1025 = vmatmul.mubr.bf16.gmra.mrb[60].mxu1 %v751_v48  ;;  %v641_v14 = vmax.f32 %v371_v56, 0.0  ;;  %v593_v48 = vadd.f32 %v592_v45, %v3111_v59  ;;  %v597_v57 = vadd.f32 %v596_v54, %v3111_v59 }
 0x121   :  { %v377_v7 = vadd.f32 %v376_v3, %v3111_v59  ;;  %v642_v18 = vmax.f32 %v373_v62, 0.0  ;;  %v731_v61 = vmax.f32 %v595_v53, 0.0  ;;  %v2601_v53 = vld [vmem:[%s3551_s5 + $0x20] sm:$0xff]  }
 0x122   :  { %v643_v15 = vmax.f32 %v375_v2, 0.0  ;;  %v730_v56 = vmax.f32 %v593_v48, 0.0  ;;  %v732_v0 = vmax.f32 %v597_v57, 0.0 }
 0x123   :  { %v644_v19 = vmax.f32 %v377_v7, 0.0  ;;  %v3213_v6 = vpack.c.bf16 %v731_v61, %v729_v52 }
 0x124   :  { %v753_v23 = vpack.c.bf16 %v643_v15, %v641_v14  ;;  %v3216_v12 = vpack.c.bf16 %v732_v0, %v730_v56  ;;  %v600_v14 = vpop.f32.mrb[28].mxu1 }
 0x125   :  { %v754_v26 = vpack.c.bf16 %v644_v19, %v642_v18  ;;  %v380_v27 = vpop.f32.mrb[36].mxu0  ;;  %v601_v16 = vadd.f32 %v600_v14, %v3109_v1  ;;  %v602_v17 = vpop.f32.mrb[29].mxu1  ;;  %v2599_v18 = vld [vmem:[%s3551_s5 + $0x10] sm:$0xff]  }
 0x126   :  { %v381_v29 = vadd.f32 %v380_v27, %v3109_v1  ;;  %v382_v30 = vpop.f32.mrb[37].mxu0  ;;  %v603_v21 = vadd.f32 %v602_v17, %v3111_v59  ;;  %v604_v22 = vpop.f32.mrb[30].mxu1  ;;  %2494 = vmatprep.subr.bf16.mxu0 %v2599_v18 }
 0x127   :  { %v383_v32 = vadd.f32 %v382_v30, %v3111_v59  ;;  %v384_v33 = vpop.f32.mrb[38].mxu0  ;;  %1032 = vmatprep.mubr.bf16.mxu1 %v754_v26  ;;  %v733_v25 = vmax.f32 %v601_v16, 0.0  ;;  %v605_v26 = vadd.f32 %v604_v22, %v3109_v1  ;;  %v606_v27 = vpop.f32.mrb[31].mxu1  ;;  %2495 = vmatpush3.bf16.msra.mxu0 %v2599_v18 }
 0x128   :  { %v385_v36 = vadd.f32 %v384_v33, %v3109_v1  ;;  %v386_v37 = vpop.f32.mrb[39].mxu0  ;;  %1033 = vmatmul.mubr.bf16.gmra.mrb[64].mxu1 %v753_v23  ;;  %v645_v46 = vmax.f32 %v381_v29, 0.0  ;;  %v734_v29 = vmax.f32 %v603_v21, 0.0  ;;  %v607_v30 = vadd.f32 %v606_v27, %v3111_v59 }
 0x129   :  { %v387_v42 = vadd.f32 %v386_v37, %v3111_v59  ;;  %v646_v50 = vmax.f32 %v383_v32, 0.0  ;;  %v735_v33 = vmax.f32 %v605_v26, 0.0 }
 0x12a   :  { %v647_v47 = vmax.f32 %v385_v36, 0.0  ;;  %v736_v41 = vmax.f32 %v607_v30, 0.0 }
 0x12b   :  { %v648_v51 = vmax.f32 %v387_v42, 0.0  ;;  %v2600_v42 = vld [vmem:[%s3551_s5 + $0x18] sm:$0xff]  }
 0x12c   :  { %v755_v55 = vpack.c.bf16 %v647_v47, %v645_v46  ;;  %v3231_v46 = vpack.c.bf16 %v735_v33, %v733_v25  ;;  %v3234_v49 = vpack.c.bf16 %v736_v41, %v734_v29  ;;  %2496 = vmatprep.subr.bf16.mxu0 %v2600_v42 }
 0x12d   :  { %v756_v58 = vpack.c.bf16 %v648_v51, %v646_v50  ;;  %v390_v60 = vpop.f32.mrb[40].mxu0  ;;  %2497 = vmatpush3.bf16.msra.mxu0 %v2600_v42 }
 0x12e   :  { %v391_v62 = vadd.f32 %v390_v60, %v3109_v1  ;;  %v392_v63 = vpop.f32.mrb[41].mxu0  ;;  %2498 = vmatprep.subr.bf16.mxu0 %v2601_v53 }
 0x12f   :  { %v393_v2 = vadd.f32 %v392_v63, %v3111_v59  ;;  %v394_v3 = vpop.f32.mrb[42].mxu0  ;;  %1040 = vmatprep.mubr.bf16.mxu1 %v756_v58 }
 0x130   :  { %v395_v7 = vadd.f32 %v394_v3, %v3109_v1  ;;  %v396_v11 = vpop.f32.mrb[43].mxu0  ;;  %1041 = vmatmul.mubr.bf16.gmra.mrb[68].mxu1 %v755_v55  ;;  %v649_v19 = vmax.f32 %v391_v62, 0.0  ;;  %v2602_v62 = vld [vmem:[%s3551_s5 + $0x28] sm:$0xff]  }
 0x131   :  { %v397_v15 = vadd.f32 %v396_v11, %v3111_v59  ;;  %v650_v23 = vmax.f32 %v393_v2, 0.0  ;;  %2499 = vmatpush3.bf16.msra.mxu0 %v2601_v53 }
 0x132   :  { %v651_v20 = vmax.f32 %v395_v7, 0.0  ;;  %2500 = vmatprep.subr.bf16.mxu0 %v2602_v62 }
 0x133   :  { %v652_v24 = vmax.f32 %v397_v15, 0.0  ;;  %v2603_v15 = vld [vmem:[%s3551_s5 + $0x30] sm:$0xff]  }
 0x134   :  { %v757_v28 = vpack.c.bf16 %v651_v20, %v649_v19 }
 0x135   :  { %v758_v31 = vpack.c.bf16 %v652_v24, %v650_v23  ;;  %v400_v32 = vpop.f32.mrb[44].mxu0  ;;  %2501 = vmatpush3.bf16.msra.mxu0 %v2602_v62  ;;  %v2604_v23 = vld [vmem:[%s3551_s5 + $0x38] sm:$0xff]  }
 0x136   :  { %v401_v36 = vadd.f32 %v400_v32, %v3109_v1  ;;  %v402_v37 = vpop.f32.mrb[45].mxu0  ;;  %2502 = vmatprep.subr.bf16.mxu0 %v2603_v15 }
 0x137   :  { %v403_v43 = vadd.f32 %v402_v37, %v3111_v59  ;;  %v404_v45 = vpop.f32.mrb[46].mxu0  ;;  %1048 = vmatprep.mubr.bf16.mxu1 %v758_v31 }
 0x138   :  { %v405_v47 = vadd.f32 %v404_v45, %v3109_v1  ;;  %v406_v48 = vpop.f32.mrb[47].mxu0  ;;  %1049 = vmatmul.mubr.bf16.gmra.mrb[72].mxu1 %v757_v28  ;;  %v653_v51 = vmax.f32 %v401_v36, 0.0 }
 0x139   :  { %v407_v50 = vadd.f32 %v406_v48, %v3111_v59  ;;  %v654_v54 = vmax.f32 %v403_v43, 0.0  ;;  %2503 = vmatpush3.bf16.msra.mxu0 %v2603_v15 }
 0x13a   :  { %v655_v52 = vmax.f32 %v405_v47, 0.0  ;;  %2504 = vmatprep.subr.bf16.mxu0 %v2604_v23 }
 0x13b   :  { %v656_v55 = vmax.f32 %v407_v50, 0.0 }
 0x13c   :  { %v759_v56 = vpack.c.bf16 %v655_v52, %v653_v51 }
 0x13d   :  { %v760_v57 = vpack.c.bf16 %v656_v55, %v654_v54  ;;  %v410_v58 = vpop.f32.mrb[48].mxu0  ;;  %2505 = vmatpush3.bf16.msra.mxu0 %v2604_v23 }
 0x13e   :  { %v411_v60 = vadd.f32 %v410_v58, %v3109_v1  ;;  %v412_v61 = vpop.f32.mrb[49].mxu0 }
 0x13f   :  { %v413_v63 = vadd.f32 %v412_v61, %v3111_v59  ;;  %v414_v0 = vpop.f32.mrb[50].mxu0  ;;  %1056 = vmatprep.mubr.bf16.mxu1 %v760_v57 }
 0x140   :  { %v415_v2 = vadd.f32 %v414_v0, %v3109_v1  ;;  %v416_v3 = vpop.f32.mrb[51].mxu0  ;;  %1057 = vmatmul.mubr.bf16.gmra.mrb[76].mxu1 %v759_v56  ;;  %v657_v11 = vmax.f32 %v411_v60, 0.0 }
 0x141   :  { %v417_v7 = vadd.f32 %v416_v3, %v3111_v59  ;;  %v658_v16 = vmax.f32 %v413_v63, 0.0 }
 0x142   :  { %v659_v14 = vmax.f32 %v415_v2, 0.0 }
 0x143   :  { %v660_v17 = vmax.f32 %v417_v7, 0.0 }
 0x144   :  { %v761_v18 = vpack.c.bf16 %v659_v14, %v657_v11 }
 0x145   :  { %v762_v19 = vpack.c.bf16 %v660_v17, %v658_v16  ;;  %v420_v20 = vpop.f32.mrb[52].mxu0 }
 0x146   :  { %v421_v21 = vadd.f32 %v420_v20, %v3109_v1  ;;  %v422_v22 = vpop.f32.mrb[53].mxu0 }
 0x147   :  { %v423_v24 = vadd.f32 %v422_v22, %v3111_v59  ;;  %v424_v25 = vpop.f32.mrb[54].mxu0  ;;  %1064 = vmatprep.mubr.bf16.mxu1 %v762_v19 }
 0x148   :  { %v425_v26 = vadd.f32 %v424_v25, %v3109_v1  ;;  %v426_v27 = vpop.f32.mrb[55].mxu0  ;;  %1065 = vmatmul.mubr.bf16.gmra.mrb[80].mxu1 %v761_v18  ;;  %v661_v29 = vmax.f32 %v421_v21, 0.0 }
 0x149   :  { %v427_v28 = vadd.f32 %v426_v27, %v3111_v59  ;;  %v662_v31 = vmax.f32 %v423_v24, 0.0 }
 0x14a   :  { %v663_v30 = vmax.f32 %v425_v26, 0.0 }
 0x14b   :  { %v664_v32 = vmax.f32 %v427_v28, 0.0 }
 0x14c   :  { %v763_v33 = vpack.c.bf16 %v663_v30, %v661_v29 }
 0x14d   :  { %v764_v36 = vpack.c.bf16 %v664_v32, %v662_v31  ;;  %v430_v37 = vpop.f32.mrb[56].mxu0 }
 0x14e   :  { %v431_v41 = vadd.f32 %v430_v37, %v3109_v1  ;;  %v432_v42 = vpop.f32.mrb[57].mxu0 }
 0x14f   :  { %v433_v43 = vadd.f32 %v432_v42, %v3111_v59  ;;  %v434_v45 = vpop.f32.mrb[58].mxu0  ;;  %1072 = vmatprep.mubr.bf16.mxu1 %v764_v36 }
 0x150   :  { %v435_v47 = vadd.f32 %v434_v45, %v3109_v1  ;;  %v436_v48 = vpop.f32.mrb[59].mxu0  ;;  %1073 = vmatmul.mubr.bf16.gmra.mrb[84].mxu1 %v763_v33  ;;  %v665_v51 = vmax.f32 %v431_v41, 0.0 }
 0x151   :  { %v437_v50 = vadd.f32 %v436_v48, %v3111_v59  ;;  %v666_v53 = vmax.f32 %v433_v43, 0.0 }
 0x152   :  { %v667_v52 = vmax.f32 %v435_v47, 0.0 }
 0x153   :  { %v668_v54 = vmax.f32 %v437_v50, 0.0 }
 0x154   :  { %v765_v55 = vpack.c.bf16 %v667_v52, %v665_v51 }
 0x155   :  { %v766_v56 = vpack.c.bf16 %v668_v54, %v666_v53  ;;  %v440_v57 = vpop.f32.mrb[60].mxu0 }
 0x156   :  { %v441_v58 = vadd.f32 %v440_v57, %v3109_v1  ;;  %v442_v60 = vpop.f32.mrb[61].mxu0 }
 0x157   :  { %v443_v61 = vadd.f32 %v442_v60, %v3111_v59  ;;  %v444_v62 = vpop.f32.mrb[62].mxu0  ;;  %1080 = vmatprep.mubr.bf16.mxu1 %v766_v56 }
 0x158   :  { %v445_v63 = vadd.f32 %v444_v62, %v3109_v1  ;;  %v446_v0 = vpop.f32.mrb[63].mxu0  ;;  %1081 = vmatmul.mubr.bf16.gmra.mrb[88].mxu1 %v765_v55  ;;  %v669_v3 = vmax.f32 %v441_v58, 0.0 }
 0x159   :  { %v447_v2 = vadd.f32 %v446_v0, %v3111_v59  ;;  %v670_v11 = vmax.f32 %v443_v61, 0.0 }
 0x15a   :  { %v671_v7 = vmax.f32 %v445_v63, 0.0 }
 0x15b   :  { %v672_v14 = vmax.f32 %v447_v2, 0.0 }
 0x15c   :  { %v767_v15 = vpack.c.bf16 %v671_v7, %v669_v3 }
 0x15d   :  { %v768_v16 = vpack.c.bf16 %v672_v14, %v670_v11  ;;  %v450_v17 = vpop.f32.mrb[64].mxu0 }
 0x15e   :  { %v451_v18 = vadd.f32 %v450_v17, %v3109_v1  ;;  %v452_v19 = vpop.f32.mrb[65].mxu0 }
 0x15f   :  { %v453_v20 = vadd.f32 %v452_v19, %v3111_v59  ;;  %v454_v21 = vpop.f32.mrb[66].mxu0  ;;  %1088 = vmatprep.mubr.bf16.mxu1 %v768_v16 }
 0x160   :  { %v455_v22 = vadd.f32 %v454_v21, %v3109_v1  ;;  %v456_v23 = vpop.f32.mrb[67].mxu0  ;;  %1089 = vmatmul.mubr.bf16.gmra.mrb[92].mxu1 %v767_v15  ;;  %v673_v25 = vmax.f32 %v451_v18, 0.0 }
 0x161   :  { %v457_v24 = vadd.f32 %v456_v23, %v3111_v59  ;;  %v674_v27 = vmax.f32 %v453_v20, 0.0 }
 0x162   :  { %v675_v26 = vmax.f32 %v455_v22, 0.0 }
 0x163   :  { %v676_v28 = vmax.f32 %v457_v24, 0.0 }
 0x164   :  { %v769_v29 = vpack.c.bf16 %v675_v26, %v673_v25 }
 0x165   :  { %v770_v30 = vpack.c.bf16 %v676_v28, %v674_v27  ;;  %v460_v31 = vpop.f32.mrb[68].mxu0 }
 0x166   :  { %v461_v32 = vadd.f32 %v460_v31, %v3109_v1  ;;  %v462_v33 = vpop.f32.mrb[69].mxu0 }
 0x167   :  { %v463_v36 = vadd.f32 %v462_v33, %v3111_v59  ;;  %v464_v37 = vpop.f32.mrb[70].mxu0  ;;  %1096 = vmatprep.mubr.bf16.mxu1 %v770_v30 }
 0x168   :  { %v465_v41 = vadd.f32 %v464_v37, %v3109_v1  ;;  %v466_v42 = vpop.f32.mrb[71].mxu0  ;;  %1097 = vmatmul.mubr.bf16.gmra.mrb[96].mxu1 %v769_v29  ;;  %v677_v45 = vmax.f32 %v461_v32, 0.0 }
 0x169   :  { %v467_v43 = vadd.f32 %v466_v42, %v3111_v59  ;;  %v678_v48 = vmax.f32 %v463_v36, 0.0 }
 0x16a   :  { %v679_v47 = vmax.f32 %v465_v41, 0.0 }
 0x16b   :  { %v680_v50 = vmax.f32 %v467_v43, 0.0 }
 0x16c   :  { %v771_v51 = vpack.c.bf16 %v679_v47, %v677_v45 }
 0x16d   :  { %v772_v52 = vpack.c.bf16 %v680_v50, %v678_v48  ;;  %v470_v53 = vpop.f32.mrb[72].mxu0 }
 0x16e   :  { %v471_v54 = vadd.f32 %v470_v53, %v3109_v1  ;;  %v472_v55 = vpop.f32.mrb[73].mxu0 }
 0x16f   :  { %v473_v56 = vadd.f32 %v472_v55, %v3111_v59  ;;  %v474_v57 = vpop.f32.mrb[74].mxu0  ;;  %1104 = vmatprep.mubr.bf16.mxu1 %v772_v52 }
 0x170   :  { %v475_v58 = vadd.f32 %v474_v57, %v3109_v1  ;;  %v476_v60 = vpop.f32.mrb[75].mxu0  ;;  %1105 = vmatmul.mubr.bf16.gmra.mrb[100].mxu1 %v771_v51  ;;  %v681_v62 = vmax.f32 %v471_v54, 0.0 }
 0x171   :  { %v477_v61 = vadd.f32 %v476_v60, %v3111_v59  ;;  %v682_v0 = vmax.f32 %v473_v56, 0.0 }
 0x172   :  { %v683_v63 = vmax.f32 %v475_v58, 0.0 }
 0x173   :  { %v684_v2 = vmax.f32 %v477_v61, 0.0 }
 0x174   :  { %v773_v3 = vpack.c.bf16 %v683_v63, %v681_v62 }
 0x175   :  { %v774_v7 = vpack.c.bf16 %v684_v2, %v682_v0  ;;  %v480_v11 = vpop.f32.mrb[76].mxu0 }
 0x176   :  { %v481_v14 = vadd.f32 %v480_v11, %v3109_v1  ;;  %v482_v15 = vpop.f32.mrb[77].mxu0 }
 0x177   :  { %v483_v16 = vadd.f32 %v482_v15, %v3111_v59  ;;  %v484_v17 = vpop.f32.mrb[78].mxu0  ;;  %1112 = vmatprep.mubr.bf16.mxu1 %v774_v7 }
 0x178   :  { %v485_v18 = vadd.f32 %v484_v17, %v3109_v1  ;;  %v486_v19 = vpop.f32.mrb[79].mxu0  ;;  %1113 = vmatmul.mubr.bf16.gmra.mrb[104].mxu1 %v773_v3  ;;  %v685_v21 = vmax.f32 %v481_v14, 0.0 }
 0x179   :  { %v487_v20 = vadd.f32 %v486_v19, %v3111_v59  ;;  %v686_v23 = vmax.f32 %v483_v16, 0.0 }
 0x17a   :  { %v687_v22 = vmax.f32 %v485_v18, 0.0 }
 0x17b   :  { %v688_v24 = vmax.f32 %v487_v20, 0.0 }
 0x17c   :  { %v775_v25 = vpack.c.bf16 %v687_v22, %v685_v21 }
 0x17d   :  { %v776_v26 = vpack.c.bf16 %v688_v24, %v686_v23  ;;  %v490_v27 = vpop.f32.mrb[80].mxu0 }
 0x17e   :  { %v491_v28 = vadd.f32 %v490_v27, %v3109_v1  ;;  %v492_v29 = vpop.f32.mrb[81].mxu0 }
 0x17f   :  { %v493_v30 = vadd.f32 %v492_v29, %v3111_v59  ;;  %v494_v31 = vpop.f32.mrb[82].mxu0  ;;  %1120 = vmatprep.mubr.bf16.mxu1 %v776_v26 }
 0x180   :  { %v495_v32 = vadd.f32 %v494_v31, %v3109_v1  ;;  %v496_v33 = vpop.f32.mrb[83].mxu0  ;;  %1121 = vmatmul.mubr.bf16.gmra.mrb[108].mxu1 %v775_v25  ;;  %v689_v37 = vmax.f32 %v491_v28, 0.0 }
 0x181   :  { %v497_v36 = vadd.f32 %v496_v33, %v3111_v59  ;;  %v690_v42 = vmax.f32 %v493_v30, 0.0 }
 0x182   :  { %v691_v41 = vmax.f32 %v495_v32, 0.0 }
 0x183   :  { %v692_v43 = vmax.f32 %v497_v36, 0.0 }
 0x184   :  { %v777_v45 = vpack.c.bf16 %v691_v41, %v689_v37 }
 0x185   :  { %v778_v47 = vpack.c.bf16 %v692_v43, %v690_v42  ;;  %v500_v48 = vpop.f32.mrb[84].mxu0 }
 0x186   :  { %v501_v50 = vadd.f32 %v500_v48, %v3109_v1  ;;  %v502_v51 = vpop.f32.mrb[85].mxu0 }
 0x187   :  { %v503_v52 = vadd.f32 %v502_v51, %v3111_v59  ;;  %v504_v53 = vpop.f32.mrb[86].mxu0  ;;  %1128 = vmatprep.mubr.bf16.mxu1 %v778_v47 }
 0x188   :  { %v505_v54 = vadd.f32 %v504_v53, %v3109_v1  ;;  %v506_v55 = vpop.f32.mrb[87].mxu0  ;;  %1129 = vmatmul.mubr.bf16.gmra.mrb[112].mxu1 %v777_v45  ;;  %v693_v57 = vmax.f32 %v501_v50, 0.0 }
 0x189   :  { %v507_v56 = vadd.f32 %v506_v55, %v3111_v59  ;;  %v694_v60 = vmax.f32 %v503_v52, 0.0 }
 0x18a   :  { %v695_v58 = vmax.f32 %v505_v54, 0.0 }
 0x18b   :  { %v696_v61 = vmax.f32 %v507_v56, 0.0 }
 0x18c   :  { %v779_v62 = vpack.c.bf16 %v695_v58, %v693_v57 }
 0x18d   :  { %v780_v63 = vpack.c.bf16 %v696_v61, %v694_v60  ;;  %v510_v0 = vpop.f32.mrb[88].mxu0 }
 0x18e   :  { %v511_v2 = vadd.f32 %v510_v0, %v3109_v1  ;;  %v512_v3 = vpop.f32.mrb[89].mxu0 }
 0x18f   :  { %v513_v7 = vadd.f32 %v512_v3, %v3111_v59  ;;  %v514_v11 = vpop.f32.mrb[90].mxu0  ;;  %1136 = vmatprep.mubr.bf16.mxu1 %v780_v63 }
 0x190   :  { %v515_v14 = vadd.f32 %v514_v11, %v3109_v1  ;;  %v516_v15 = vpop.f32.mrb[91].mxu0  ;;  %1137 = vmatmul.mubr.bf16.gmra.mrb[116].mxu1 %v779_v62  ;;  %v697_v17 = vmax.f32 %v511_v2, 0.0 }
 0x191   :  { %v517_v16 = vadd.f32 %v516_v15, %v3111_v59  ;;  %v698_v19 = vmax.f32 %v513_v7, 0.0 }
 0x192   :  { %v699_v18 = vmax.f32 %v515_v14, 0.0 }
 0x193   :  { %v700_v20 = vmax.f32 %v517_v16, 0.0 }
 0x194   :  { %v781_v21 = vpack.c.bf16 %v699_v18, %v697_v17 }
 0x195   :  { %v782_v22 = vpack.c.bf16 %v700_v20, %v698_v19  ;;  %v520_v23 = vpop.f32.mrb[92].mxu0 }
 0x196   :  { %v521_v24 = vadd.f32 %v520_v23, %v3109_v1  ;;  %v522_v25 = vpop.f32.mrb[93].mxu0 }
 0x197   :  { %v523_v26 = vadd.f32 %v522_v25, %v3111_v59  ;;  %v524_v27 = vpop.f32.mrb[94].mxu0  ;;  %1144 = vmatprep.mubr.bf16.mxu1 %v782_v22 }
 0x198   :  { %v525_v28 = vadd.f32 %v524_v27, %v3109_v1  ;;  %v526_v29 = vpop.f32.mrb[95].mxu0  ;;  %1145 = vmatmul.mubr.bf16.gmra.mrb[120].mxu1 %v781_v21  ;;  %v701_v31 = vmax.f32 %v521_v24, 0.0  ;;  %v3307_v1 = vld [vmem:[%s3552_s4] ss:$0 sm:$0xff] }
 0x199   :  { %v527_v30 = vadd.f32 %v526_v29, %v3111_v59  ;;  %v702_v33 = vmax.f32 %v523_v26, 0.0 }
 0x19a   :  { %v703_v32 = vmax.f32 %v525_v28, 0.0 }
 0x19b   :  { %v704_v36 = vmax.f32 %v527_v30, 0.0 }
 0x19c   :  { %v783_v37 = vpack.c.bf16 %v703_v32, %v701_v31 }
 0x19d   :  { %v784_v41 = vpack.c.bf16 %v704_v36, %v702_v33 }
 0x19f   :  { %1152 = vmatprep.mubr.bf16.mxu1 %v784_v41 }
 0x1a0   :  { %1153 = vmatmul.mubr.bf16.gmra.mrb[124].mxu1 %v783_v37 }
 0x1a1   :  { %1160 = vmatprep.mubr.bf16.mxu1 %v3139_v13 }
 0x1a8   :  { %1161 = vmatmul.mubr.bf16.gmra.mrb[128].mxu1 %v3136_v10 }
 0x1a9   :  { %1168 = vmatprep.mubr.bf16.mxu1 %v3154_v44 }
 0x1b0   :  { %1169 = vmatmul.mubr.bf16.gmra.mrb[132].mxu1 %v3151_v40 }
 0x1b1   :  { %1176 = vmatprep.mubr.bf16.mxu1 %v3166_v8 }
 0x1b8   :  { %1177 = vmatmul.mubr.bf16.gmra.mrb[136].mxu1 %v3163_v5 }
 0x1b9   :  { %1184 = vmatprep.mubr.bf16.mxu1 %v3178_v38 }
 0x1bb   :  { %v970_v59 = vpop.f32.mrb[32].mxu1 }
 0x1bc   :  { %v971_v13 = vadd.f32 %v3307_v1, %v970_v59  ;;  %v972_v42 = vpop.f32.mrb[33].mxu1 }
 0x1bd   :  { %v973_v10 = vpop.f32.mrb[34].mxu1 }
 0x1be   :  { %v974_v44 = vadd.f32 %v3307_v1, %v973_v10  ;;  %v975_v43 = vpop.f32.mrb[35].mxu1  ;;  %v1225_v40 = vmax.f32 %v971_v13, 0.0 }
 0x1c0   :  { %v1226_v45 = vmax.f32 %v974_v44, 0.0  ;;  %1185 = vmatmul.mubr.bf16.gmra.mrb[140].mxu1 %v3175_v35 }
 0x1c1   :  { %1192 = vmatprep.mubr.bf16.mxu1 %v3193_v9 }
 0x1c2   :  { %v1289_v5 = vpack.c.bf16 %v1226_v45, %v1225_v40 }
 0x1c3   :  { %v978_v8 = vpop.f32.mrb[36].mxu1 }
 0x1c4   :  { %v979_v38 = vadd.f32 %v3307_v1, %v978_v8  ;;  %v980_v47 = vpop.f32.mrb[37].mxu1  ;;  %2506 = vmatprep.mubr.bf16.mxu0 %v1289_v5 }
 0x1c5   :  { %v981_v48 = vpop.f32.mrb[38].mxu1 }
 0x1c6   :  { %v982_v50 = vadd.f32 %v3307_v1, %v981_v48  ;;  %v983_v51 = vpop.f32.mrb[39].mxu1  ;;  %v1227_v52 = vmax.f32 %v979_v38, 0.0 }
 0x1c8   :  { %v1228_v53 = vmax.f32 %v982_v50, 0.0  ;;  %1193 = vmatmul.mubr.bf16.gmra.mrb[144].mxu1 %v3190_v4 }
 0x1c9   :  { %1200 = vmatprep.mubr.bf16.mxu1 %v3204_v39 }
 0x1ca   :  { %v1290_v54 = vpack.c.bf16 %v1228_v53, %v1227_v52 }
 0x1cb   :  { %v986_v35 = vpop.f32.mrb[40].mxu1 }
 0x1cc   :  { %v987_v9 = vadd.f32 %v3307_v1, %v986_v35  ;;  %v988_v55 = vpop.f32.mrb[41].mxu1  ;;  %2507 = vmatmul.mubr.bf16.vlgmr.msra.gmra.mrb[96].mxu0 %v1290_v54 }
 0x1cd   :  { %v989_v56 = vpop.f32.mrb[42].mxu1 }
 0x1ce   :  { %v990_v57 = vadd.f32 %v3307_v1, %v989_v56  ;;  %v991_v58 = vpop.f32.mrb[43].mxu1  ;;  %v1229_v60 = vmax.f32 %v987_v9, 0.0 }
 0x1d0   :  { %v1230_v61 = vmax.f32 %v990_v57, 0.0  ;;  %1201 = vmatmul.mubr.bf16.gmra.mrb[148].mxu1 %v3201_v34 }
 0x1d1   :  { %1208 = vmatprep.mubr.bf16.mxu1 %v3216_v12 }
 0x1d2   :  { %v1291_v62 = vpack.c.bf16 %v1230_v61, %v1229_v60 }
 0x1d3   :  { %v994_v4 = vpop.f32.mrb[44].mxu1 }
 0x1d4   :  { %v995_v39 = vadd.f32 %v3307_v1, %v994_v4  ;;  %v996_v63 = vpop.f32.mrb[45].mxu1  ;;  %2510 = vmatprep.mubr.bf16.mxu0 %v1291_v62 }
 0x1d5   :  { %v997_v0 = vpop.f32.mrb[46].mxu1 }
 0x1d6   :  { %v998_v2 = vadd.f32 %v3307_v1, %v997_v0  ;;  %v999_v3 = vpop.f32.mrb[47].mxu1  ;;  %v1231_v7 = vmax.f32 %v995_v39, 0.0 }
 0x1d8   :  { %v1232_v11 = vmax.f32 %v998_v2, 0.0  ;;  %1209 = vmatmul.mubr.bf16.gmra.mrb[152].mxu1 %v3213_v6 }
 0x1d9   :  { %1216 = vmatprep.mubr.bf16.mxu1 %v3234_v49 }
 0x1da   :  { %v1292_v14 = vpack.c.bf16 %v1232_v11, %v1231_v7 }
 0x1db   :  { %v1002_v34 = vpop.f32.mrb[48].mxu1 }
 0x1dc   :  { %v1003_v12 = vadd.f32 %v3307_v1, %v1002_v34  ;;  %v1004_v15 = vpop.f32.mrb[49].mxu1  ;;  %2511 = vmatmul.mubr.bf16.gmra.mrb[100].mxu0 %v1292_v14 }
 0x1dd   :  { %v1005_v16 = vpop.f32.mrb[50].mxu1 }
 0x1de   :  { %v1006_v17 = vadd.f32 %v3307_v1, %v1005_v16  ;;  %v1007_v18 = vpop.f32.mrb[51].mxu1  ;;  %v1233_v19 = vmax.f32 %v1003_v12, 0.0 }
 0x1e0   :  { %v1234_v20 = vmax.f32 %v1006_v17, 0.0  ;;  %1217 = vmatmul.mubr.bf16.gmra.mrb[156].mxu1 %v3231_v46 }
 0x1e2   :  { %v1293_v21 = vpack.c.bf16 %v1234_v20, %v1233_v19 }
 0x1e3   :  { %v1010_v22 = vpop.f32.mrb[52].mxu1 }
 0x1e4   :  { %v1011_v6 = vadd.f32 %v3307_v1, %v1010_v22  ;;  %v1012_v23 = vpop.f32.mrb[53].mxu1  ;;  %2514 = vmatprep.mubr.bf16.mxu0 %v1293_v21 }
 0x1e5   :  { %v1013_v49 = vpop.f32.mrb[54].mxu1 }
 0x1e6   :  { %v1014_v24 = vadd.f32 %v3307_v1, %v1013_v49  ;;  %v1015_v25 = vpop.f32.mrb[55].mxu1  ;;  %v1235_v26 = vmax.f32 %v1011_v6, 0.0 }
 0x1e8   :  { %v1236_v27 = vmax.f32 %v1014_v24, 0.0 }
 0x1ea   :  { %v1294_v28 = vpack.c.bf16 %v1236_v27, %v1235_v26 }
 0x1eb   :  { %v1018_v29 = vpop.f32.mrb[56].mxu1 }
 0x1ec   :  { %v1019_v30 = vadd.f32 %v3307_v1, %v1018_v29  ;;  %v1020_v31 = vpop.f32.mrb[57].mxu1  ;;  %2515 = vmatmul.mubr.bf16.gmra.mrb[104].mxu0 %v1294_v28 }
 0x1ed   :  { %v1021_v32 = vpop.f32.mrb[58].mxu1 }
 0x1ee   :  { %v1022_v46 = vadd.f32 %v3307_v1, %v1021_v32  ;;  %v1023_v33 = vpop.f32.mrb[59].mxu1  ;;  %v1237_v36 = vmax.f32 %v1019_v30, 0.0 }
 0x1f0   :  { %v1238_v37 = vmax.f32 %v1022_v46, 0.0 }
 0x1f2   :  { %v1295_v41 = vpack.c.bf16 %v1238_v37, %v1237_v36 }
 0x1f3   :  { %v1026_v59 = vpop.f32.mrb[60].mxu1 }
 0x1f4   :  { %v1027_v13 = vadd.f32 %v3307_v1, %v1026_v59  ;;  %v1028_v42 = vpop.f32.mrb[61].mxu1  ;;  %2518 = vmatprep.mubr.bf16.mxu0 %v1295_v41 }
 0x1f5   :  { %v1029_v10 = vpop.f32.mrb[62].mxu1 }
 0x1f6   :  { %v1030_v44 = vadd.f32 %v3307_v1, %v1029_v10  ;;  %v1031_v43 = vpop.f32.mrb[63].mxu1  ;;  %v1239_v40 = vmax.f32 %v1027_v13, 0.0 }
 0x1f8   :  { %v1240_v45 = vmax.f32 %v1030_v44, 0.0 }
 0x1fa   :  { %v1296_v5 = vpack.c.bf16 %v1240_v45, %v1239_v40 }
 0x1fb   :  { %v1034_v8 = vpop.f32.mrb[64].mxu1 }
 0x1fc   :  { %v1035_v38 = vadd.f32 %v3307_v1, %v1034_v8  ;;  %v1036_v47 = vpop.f32.mrb[65].mxu1  ;;  %2519 = vmatmul.mubr.bf16.gmra.mrb[108].mxu0 %v1296_v5 }
 0x1fd   :  { %v1037_v48 = vpop.f32.mrb[66].mxu1 }
 0x1fe   :  { %v1038_v50 = vadd.f32 %v3307_v1, %v1037_v48  ;;  %v1039_v51 = vpop.f32.mrb[67].mxu1  ;;  %v1241_v52 = vmax.f32 %v1035_v38, 0.0 }
 0x200   :  { %v1242_v53 = vmax.f32 %v1038_v50, 0.0 }
 0x202   :  { %v1297_v54 = vpack.c.bf16 %v1242_v53, %v1241_v52 }
 0x203   :  { %v1042_v35 = vpop.f32.mrb[68].mxu1 }
 0x204   :  { %v1043_v9 = vadd.f32 %v3307_v1, %v1042_v35  ;;  %v1044_v55 = vpop.f32.mrb[69].mxu1  ;;  %2522 = vmatprep.mubr.bf16.mxu0 %v1297_v54 }
 0x205   :  { %v1045_v56 = vpop.f32.mrb[70].mxu1 }
 0x206   :  { %v1046_v57 = vadd.f32 %v3307_v1, %v1045_v56  ;;  %v1047_v58 = vpop.f32.mrb[71].mxu1  ;;  %v1243_v60 = vmax.f32 %v1043_v9, 0.0 }
 0x208   :  { %v1244_v61 = vmax.f32 %v1046_v57, 0.0 }
 0x20a   :  { %v1298_v62 = vpack.c.bf16 %v1244_v61, %v1243_v60 }
 0x20b   :  { %v1050_v4 = vpop.f32.mrb[72].mxu1 }
 0x20c   :  { %v1051_v39 = vadd.f32 %v3307_v1, %v1050_v4  ;;  %v1052_v63 = vpop.f32.mrb[73].mxu1  ;;  %2523 = vmatmul.mubr.bf16.gmra.mrb[112].mxu0 %v1298_v62 }
 0x20d   :  { %v1053_v0 = vpop.f32.mrb[74].mxu1 }
 0x20e   :  { %v1054_v2 = vadd.f32 %v3307_v1, %v1053_v0  ;;  %v1055_v3 = vpop.f32.mrb[75].mxu1  ;;  %v1245_v7 = vmax.f32 %v1051_v39, 0.0 }
 0x210   :  { %v1246_v11 = vmax.f32 %v1054_v2, 0.0 }
 0x212   :  { %v1299_v14 = vpack.c.bf16 %v1246_v11, %v1245_v7 }
 0x213   :  { %v1058_v34 = vpop.f32.mrb[76].mxu1 }
 0x214   :  { %v1059_v12 = vadd.f32 %v3307_v1, %v1058_v34  ;;  %v1060_v15 = vpop.f32.mrb[77].mxu1  ;;  %2526 = vmatprep.mubr.bf16.mxu0 %v1299_v14 }
 0x215   :  { %v1061_v16 = vpop.f32.mrb[78].mxu1 }
 0x216   :  { %v1062_v17 = vadd.f32 %v3307_v1, %v1061_v16  ;;  %v1063_v18 = vpop.f32.mrb[79].mxu1  ;;  %v1247_v19 = vmax.f32 %v1059_v12, 0.0 }
 0x218   :  { %v1248_v20 = vmax.f32 %v1062_v17, 0.0 }
 0x21a   :  { %v1300_v21 = vpack.c.bf16 %v1248_v20, %v1247_v19 }
 0x21b   :  { %v1066_v22 = vpop.f32.mrb[80].mxu1 }
 0x21c   :  { %v1067_v6 = vadd.f32 %v3307_v1, %v1066_v22  ;;  %v1068_v23 = vpop.f32.mrb[81].mxu1  ;;  %2527 = vmatmul.mubr.bf16.gmra.mrb[116].mxu0 %v1300_v21 }
 0x21d   :  { %v1069_v49 = vpop.f32.mrb[82].mxu1 }
 0x21e   :  { %v1070_v24 = vadd.f32 %v3307_v1, %v1069_v49  ;;  %v1071_v25 = vpop.f32.mrb[83].mxu1  ;;  %v1249_v26 = vmax.f32 %v1067_v6, 0.0 }
 0x220   :  { %v1250_v27 = vmax.f32 %v1070_v24, 0.0 }
 0x222   :  { %v1301_v28 = vpack.c.bf16 %v1250_v27, %v1249_v26 }
 0x223   :  { %v1074_v29 = vpop.f32.mrb[84].mxu1 }
 0x224   :  { %v1075_v30 = vadd.f32 %v3307_v1, %v1074_v29  ;;  %v1076_v31 = vpop.f32.mrb[85].mxu1  ;;  %2530 = vmatprep.mubr.bf16.mxu0 %v1301_v28 }
 0x225   :  { %v1077_v32 = vpop.f32.mrb[86].mxu1 }
 0x226   :  { %v1078_v46 = vadd.f32 %v3307_v1, %v1077_v32  ;;  %v1079_v33 = vpop.f32.mrb[87].mxu1  ;;  %v1251_v36 = vmax.f32 %v1075_v30, 0.0 }
 0x228   :  { %v1252_v37 = vmax.f32 %v1078_v46, 0.0 }
 0x22a   :  { %v1302_v41 = vpack.c.bf16 %v1252_v37, %v1251_v36 }
 0x22b   :  { %v1082_v59 = vpop.f32.mrb[88].mxu1 }
 0x22c   :  { %v1083_v13 = vadd.f32 %v3307_v1, %v1082_v59  ;;  %v1084_v42 = vpop.f32.mrb[89].mxu1  ;;  %2531 = vmatmul.mubr.bf16.gmra.mrb[120].mxu0 %v1302_v41 }
 0x22d   :  { %v1085_v10 = vpop.f32.mrb[90].mxu1 }
 0x22e   :  { %v1086_v44 = vadd.f32 %v3307_v1, %v1085_v10  ;;  %v1087_v43 = vpop.f32.mrb[91].mxu1  ;;  %v1253_v40 = vmax.f32 %v1083_v13, 0.0 }
 0x230   :  { %v1254_v45 = vmax.f32 %v1086_v44, 0.0 }
 0x232   :  { %v1303_v5 = vpack.c.bf16 %v1254_v45, %v1253_v40 }
 0x233   :  { %v1090_v8 = vpop.f32.mrb[92].mxu1 }
 0x234   :  { %v1091_v38 = vadd.f32 %v3307_v1, %v1090_v8  ;;  %v1092_v47 = vpop.f32.mrb[93].mxu1  ;;  %2534 = vmatprep.mubr.bf16.mxu0 %v1303_v5 }
 0x235   :  { %v1093_v48 = vpop.f32.mrb[94].mxu1 }
 0x236   :  { %v1094_v50 = vadd.f32 %v3307_v1, %v1093_v48  ;;  %v1095_v51 = vpop.f32.mrb[95].mxu1  ;;  %v1255_v52 = vmax.f32 %v1091_v38, 0.0 }
 0x238   :  { %v1256_v53 = vmax.f32 %v1094_v50, 0.0 }
 0x23a   :  { %v1304_v54 = vpack.c.bf16 %v1256_v53, %v1255_v52 }
 0x23b   :  { %v1098_v35 = vpop.f32.mrb[96].mxu1 }
 0x23c   :  { %v1099_v9 = vadd.f32 %v3307_v1, %v1098_v35  ;;  %v1100_v55 = vpop.f32.mrb[97].mxu1  ;;  %2535 = vmatmul.mubr.bf16.gmra.mrb[124].mxu0 %v1304_v54 }
 0x23d   :  { %v1101_v56 = vpop.f32.mrb[98].mxu1 }
 0x23e   :  { %v1102_v57 = vadd.f32 %v3307_v1, %v1101_v56  ;;  %v1103_v58 = vpop.f32.mrb[99].mxu1  ;;  %v1257_v60 = vmax.f32 %v1099_v9, 0.0 }
 0x240   :  { %v1258_v61 = vmax.f32 %v1102_v57, 0.0 }
 0x242   :  { %v1305_v62 = vpack.c.bf16 %v1258_v61, %v1257_v60 }
 0x243   :  { %v1106_v4 = vpop.f32.mrb[100].mxu1 }
 0x244   :  { %v1107_v39 = vadd.f32 %v3307_v1, %v1106_v4  ;;  %v1108_v63 = vpop.f32.mrb[101].mxu1  ;;  %2538 = vmatprep.mubr.bf16.mxu0 %v1305_v62 }
 0x245   :  { %v1109_v0 = vpop.f32.mrb[102].mxu1 }
 0x246   :  { %v1110_v2 = vadd.f32 %v3307_v1, %v1109_v0  ;;  %v1111_v3 = vpop.f32.mrb[103].mxu1  ;;  %v1259_v7 = vmax.f32 %v1107_v39, 0.0 }
 0x248   :  { %v1260_v11 = vmax.f32 %v1110_v2, 0.0 }
 0x24a   :  { %v1306_v14 = vpack.c.bf16 %v1260_v11, %v1259_v7 }
 0x24b   :  { %v1114_v34 = vpop.f32.mrb[104].mxu1 }
 0x24c   :  { %v1115_v12 = vadd.f32 %v3307_v1, %v1114_v34  ;;  %v1116_v15 = vpop.f32.mrb[105].mxu1  ;;  %2539 = vmatmul.mubr.bf16.gmra.mrb[128].mxu0 %v1306_v14 }
 0x24d   :  { %v1117_v16 = vpop.f32.mrb[106].mxu1 }
 0x24e   :  { %v1118_v17 = vadd.f32 %v3307_v1, %v1117_v16  ;;  %v1119_v18 = vpop.f32.mrb[107].mxu1  ;;  %v1261_v19 = vmax.f32 %v1115_v12, 0.0 }
 0x250   :  { %v1262_v20 = vmax.f32 %v1118_v17, 0.0 }
 0x252   :  { %v1307_v21 = vpack.c.bf16 %v1262_v20, %v1261_v19 }
 0x253   :  { %v1122_v22 = vpop.f32.mrb[108].mxu1 }
 0x254   :  { %v1123_v6 = vadd.f32 %v3307_v1, %v1122_v22  ;;  %v1124_v23 = vpop.f32.mrb[109].mxu1  ;;  %2542 = vmatprep.mubr.bf16.mxu0 %v1307_v21 }
 0x255   :  { %v1125_v49 = vpop.f32.mrb[110].mxu1 }
 0x256   :  { %v1126_v24 = vadd.f32 %v3307_v1, %v1125_v49  ;;  %v1127_v25 = vpop.f32.mrb[111].mxu1  ;;  %v1263_v26 = vmax.f32 %v1123_v6, 0.0 }
 0x258   :  { %v1264_v27 = vmax.f32 %v1126_v24, 0.0 }
 0x25a   :  { %v1308_v28 = vpack.c.bf16 %v1264_v27, %v1263_v26 }
 0x25b   :  { %v1130_v29 = vpop.f32.mrb[112].mxu1 }
 0x25c   :  { %v1131_v30 = vadd.f32 %v3307_v1, %v1130_v29  ;;  %v1132_v31 = vpop.f32.mrb[113].mxu1  ;;  %2543 = vmatmul.mubr.bf16.gmra.mrb[132].mxu0 %v1308_v28 }
 0x25d   :  { %v1133_v32 = vpop.f32.mrb[114].mxu1 }
 0x25e   :  { %v1134_v46 = vadd.f32 %v3307_v1, %v1133_v32  ;;  %v1135_v33 = vpop.f32.mrb[115].mxu1  ;;  %v1265_v36 = vmax.f32 %v1131_v30, 0.0 }
 0x260   :  { %v1266_v37 = vmax.f32 %v1134_v46, 0.0 }
 0x262   :  { %v1309_v41 = vpack.c.bf16 %v1266_v37, %v1265_v36 }
 0x263   :  { %v1138_v59 = vpop.f32.mrb[116].mxu1 }
 0x264   :  { %v1139_v13 = vadd.f32 %v3307_v1, %v1138_v59  ;;  %v1140_v42 = vpop.f32.mrb[117].mxu1  ;;  %2546 = vmatprep.mubr.bf16.mxu0 %v1309_v41 }
 0x265   :  { %v1141_v10 = vpop.f32.mrb[118].mxu1 }
 0x266   :  { %v1142_v44 = vadd.f32 %v3307_v1, %v1141_v10  ;;  %v1143_v43 = vpop.f32.mrb[119].mxu1  ;;  %v1267_v40 = vmax.f32 %v1139_v13, 0.0 }
 0x268   :  { %v1268_v45 = vmax.f32 %v1142_v44, 0.0  ;;  %v3378_v44 = vld [vmem:[%s3553_s6] ss:$0 sm:$0xff] }
 0x26a   :  { %v1310_v5 = vpack.c.bf16 %v1268_v45, %v1267_v40 }
 0x26b   :  { %v1146_v8 = vpop.f32.mrb[120].mxu1 }
 0x26c   :  { %v1147_v38 = vadd.f32 %v3307_v1, %v1146_v8  ;;  %v1148_v47 = vpop.f32.mrb[121].mxu1  ;;  %2547 = vmatmul.mubr.bf16.gmra.mrb[136].mxu0 %v1310_v5 }
 0x26d   :  { %v1149_v48 = vpop.f32.mrb[122].mxu1 }
 0x26e   :  { %v1150_v50 = vadd.f32 %v3307_v1, %v1149_v48  ;;  %v1151_v51 = vpop.f32.mrb[123].mxu1  ;;  %v1269_v52 = vmax.f32 %v1147_v38, 0.0 }
 0x270   :  { %v1270_v53 = vmax.f32 %v1150_v50, 0.0 }
 0x272   :  { %v1311_v54 = vpack.c.bf16 %v1270_v53, %v1269_v52 }
 0x273   :  { %v1154_v35 = vpop.f32.mrb[124].mxu1 }
 0x274   :  { %v1155_v9 = vadd.f32 %v3307_v1, %v1154_v35  ;;  %v1156_v55 = vpop.f32.mrb[125].mxu1  ;;  %2550 = vmatprep.mubr.bf16.mxu0 %v1311_v54 }
 0x275   :  { %v1157_v56 = vpop.f32.mrb[126].mxu1 }
 0x276   :  { %v1158_v57 = vadd.f32 %v3307_v1, %v1157_v56  ;;  %v1159_v58 = vpop.f32.mrb[127].mxu1  ;;  %v1271_v60 = vmax.f32 %v1155_v9, 0.0 }
 0x278   :  { %v1272_v61 = vmax.f32 %v1158_v57, 0.0 }
 0x27a   :  { %v1312_v62 = vpack.c.bf16 %v1272_v61, %v1271_v60 }
 0x27b   :  { %v1162_v4 = vpop.f32.mrb[128].mxu1 }
 0x27c   :  { %v1163_v39 = vadd.f32 %v3307_v1, %v1162_v4  ;;  %v1164_v63 = vpop.f32.mrb[129].mxu1  ;;  %2551 = vmatmul.mubr.bf16.gmra.mrb[140].mxu0 %v1312_v62 }
 0x27d   :  { %v1165_v0 = vpop.f32.mrb[130].mxu1 }
 0x27e   :  { %v1166_v2 = vadd.f32 %v3307_v1, %v1165_v0  ;;  %v1167_v3 = vpop.f32.mrb[131].mxu1  ;;  %v1273_v7 = vmax.f32 %v1163_v39, 0.0 }
 0x280   :  { %v1274_v11 = vmax.f32 %v1166_v2, 0.0 }
 0x282   :  { %v1313_v14 = vpack.c.bf16 %v1274_v11, %v1273_v7 }
 0x283   :  { %v1170_v34 = vpop.f32.mrb[132].mxu1 }
 0x284   :  { %v1171_v12 = vadd.f32 %v3307_v1, %v1170_v34  ;;  %v1172_v15 = vpop.f32.mrb[133].mxu1  ;;  %2554 = vmatprep.mubr.bf16.mxu0 %v1313_v14 }
 0x285   :  { %v1173_v16 = vpop.f32.mrb[134].mxu1 }
 0x286   :  { %v1174_v17 = vadd.f32 %v3307_v1, %v1173_v16  ;;  %v1175_v18 = vpop.f32.mrb[135].mxu1  ;;  %v1275_v19 = vmax.f32 %v1171_v12, 0.0 }
 0x288   :  { %v1276_v20 = vmax.f32 %v1174_v17, 0.0 }
 0x28a   :  { %v1314_v21 = vpack.c.bf16 %v1276_v20, %v1275_v19 }
 0x28b   :  { %v1178_v22 = vpop.f32.mrb[136].mxu1 }
 0x28c   :  { %v1179_v6 = vadd.f32 %v3307_v1, %v1178_v22  ;;  %v1180_v23 = vpop.f32.mrb[137].mxu1  ;;  %2555 = vmatmul.mubr.bf16.gmra.mrb[144].mxu0 %v1314_v21 }
 0x28d   :  { %v1181_v49 = vpop.f32.mrb[138].mxu1 }
 0x28e   :  { %v1182_v24 = vadd.f32 %v3307_v1, %v1181_v49  ;;  %v1183_v25 = vpop.f32.mrb[139].mxu1  ;;  %v1277_v26 = vmax.f32 %v1179_v6, 0.0 }
 0x290   :  { %v1278_v27 = vmax.f32 %v1182_v24, 0.0 }
 0x292   :  { %v1315_v28 = vpack.c.bf16 %v1278_v27, %v1277_v26 }
 0x293   :  { %v1186_v29 = vpop.f32.mrb[140].mxu1 }
 0x294   :  { %v1187_v30 = vadd.f32 %v3307_v1, %v1186_v29  ;;  %v1188_v31 = vpop.f32.mrb[141].mxu1  ;;  %2558 = vmatprep.mubr.bf16.mxu0 %v1315_v28 }
 0x295   :  { %v1189_v32 = vpop.f32.mrb[142].mxu1 }
 0x296   :  { %v1190_v46 = vadd.f32 %v3307_v1, %v1189_v32  ;;  %v1191_v33 = vpop.f32.mrb[143].mxu1  ;;  %v1279_v36 = vmax.f32 %v1187_v30, 0.0 }
 0x298   :  { %v1280_v37 = vmax.f32 %v1190_v46, 0.0 }
 0x29a   :  { %v1316_v41 = vpack.c.bf16 %v1280_v37, %v1279_v36 }
 0x29b   :  { %v1194_v59 = vpop.f32.mrb[144].mxu1 }
 0x29c   :  { %v1195_v13 = vadd.f32 %v3307_v1, %v1194_v59  ;;  %v1196_v42 = vpop.f32.mrb[145].mxu1  ;;  %2559 = vmatmul.mubr.bf16.gmra.mrb[148].mxu0 %v1316_v41 }
 0x29d   :  { %v1197_v10 = vpop.f32.mrb[146].mxu1 }
 0x29e   :  { %v1198_v43 = vadd.f32 %v3307_v1, %v1197_v10  ;;  %v1199_v40 = vpop.f32.mrb[147].mxu1  ;;  %v1281_v5 = vmax.f32 %v1195_v13, 0.0 }
 0x29f   :  { %v2508_v45 = vpop.f32.mrb[96].mxu0 }
 0x2a0   :  { %v1282_v8 = vmax.f32 %v1198_v43, 0.0  ;;  %v1435_v38 = vadd.f32 %v2508_v45, %v3378_v44  ;;  %v1426_v47 = vpop.f32.mrb[97].mxu0 }
 0x2a1   :  { %v1427_v48 = vadd.f32 %v3378_v44, %v1426_v47  ;;  %v2509_v50 = vpop.f32.mrb[98].mxu0 }
 0x2a2   :  { %v1317_v51 = vpack.c.bf16 %v1282_v8, %v1281_v5  ;;  %2605 = vtanh.f32 %v1435_v38  ;;  %v1438_v52 = vadd.f32 %v2509_v50, %v3378_v44  ;;  %v1429_v53 = vpop.f32.mrb[99].mxu0 }
 0x2a3   :  { %2607 = vtanh.f32 %v1427_v48  ;;  %v1430_v54 = vadd.f32 %v3378_v44, %v1429_v53  ;;  %v1202_v35 = vpop.f32.mrb[148].mxu1 }
 0x2a4   :  { %2609 = vtanh.f32 %v1438_v52  ;;  %v1203_v9 = vadd.f32 %v3307_v1, %v1202_v35  ;;  %v1204_v55 = vpop.f32.mrb[149].mxu1  ;;  %2562 = vmatprep.mubr.bf16.mxu0 %v1317_v51 }
 0x2a5   :  { %2611 = vtanh.f32 %v1430_v54  ;;  %v1205_v56 = vpop.f32.mrb[150].mxu1 }
 0x2a6   :  { %v1206_v57 = vadd.f32 %v3307_v1, %v1205_v56  ;;  %v1207_v58 = vpop.f32.mrb[151].mxu1  ;;  %v1283_v60 = vmax.f32 %v1203_v9, 0.0 }
 0x2a8   :  { %v1284_v61 = vmax.f32 %v1206_v57, 0.0 }
 0x2aa   :  { %v1318_v62 = vpack.c.bf16 %v1284_v61, %v1283_v60 }
 0x2ab   :  { %v1210_v4 = vpop.f32.mrb[152].mxu1 }
 0x2ac   :  { %v2606_v39 = vpop.eup %2605  ;;  %v1211_v63 = vadd.f32 %v3307_v1, %v1210_v4  ;;  %v1212_v0 = vpop.f32.mrb[153].mxu1  ;;  %2563 = vmatmul.mubr.bf16.gmra.mrb[152].mxu0 %v1318_v62 }
 0x2ad   :  { %v2608_v2 = vpop.eup %2607  ;;  %v1213_v3 = vpop.f32.mrb[154].mxu1 }
 0x2ae   :  { %v2610_v7 = vpop.eup %2609  ;;  %v1214_v11 = vadd.f32 %v3307_v1, %v1213_v3  ;;  %v1215_v14 = vpop.f32.mrb[155].mxu1  ;;  %v1285_v17 = vmax.f32 %v1211_v63, 0.0 }
 0x2af   :  { %v2612_v34 = vpop.eup %2611  ;;  %v2267_v12 = vpack.c.bf16 %v2610_v7, %v2606_v39  ;;  %v2512_v15 = vpop.f32.mrb[100].mxu0 }
 0x2b0   :  { %v2262_v16 = vpack.c.bf16 %v2612_v34, %v2608_v2  ;;  %v1286_v18 = vmax.f32 %v1214_v11, 0.0  ;;  %v1451_v19 = vadd.f32 %v2512_v15, %v3378_v44  ;;  %v1442_v20 = vpop.f32.mrb[101].mxu0 }
 0x2b1   :  { %2419 = vst [vmem:[%s3554_s7 + $0x8] sm:$0xff] %v2267_v12   ;;  %v1443_v21 = vadd.f32 %v3378_v44, %v1442_v20  ;;  %v2513_v22 = vpop.f32.mrb[102].mxu0 }
 0x2b2   :  { %2263 = vst [vmem:[%s3554_s7] sm:$0xff] %v2262_v16   ;;  %v1319_v6 = vpack.c.bf16 %v1286_v18, %v1285_v17  ;;  %2613 = vtanh.f32 %v1451_v19  ;;  %v1454_v23 = vadd.f32 %v2513_v22, %v3378_v44  ;;  %v1445_v49 = vpop.f32.mrb[103].mxu0 }
 0x2b3   :  { %2615 = vtanh.f32 %v1443_v21  ;;  %v1446_v24 = vadd.f32 %v3378_v44, %v1445_v49  ;;  %v1218_v25 = vpop.f32.mrb[156].mxu1 }
 0x2b4   :  { %2617 = vtanh.f32 %v1454_v23  ;;  %v1219_v26 = vadd.f32 %v3307_v1, %v1218_v25  ;;  %v1220_v27 = vpop.f32.mrb[157].mxu1  ;;  %2566 = vmatprep.mubr.bf16.mxu0 %v1319_v6 }
 0x2b5   :  { %2619 = vtanh.f32 %v1446_v24  ;;  %v1221_v28 = vpop.f32.mrb[158].mxu1 }
 0x2b6   :  { %v1222_v29 = vadd.f32 %v3307_v1, %v1221_v28  ;;  %v1223_v30 = vpop.f32.mrb[159].mxu1  ;;  %v1287_v31 = vmax.f32 %v1219_v26, 0.0 }
 0x2b8   :  { %v1288_v32 = vmax.f32 %v1222_v29, 0.0 }
 0x2ba   :  { %v1320_v46 = vpack.c.bf16 %v1288_v32, %v1287_v31 }
 0x2bc   :  { %v2614_v33 = vpop.eup %2613  ;;  %2567 = vmatmul.mubr.bf16.gmra.mrb[156].mxu0 %v1320_v46 }
 0x2bd   :  { %v2616_v36 = vpop.eup %2615 }
 0x2be   :  { %v2618_v37 = vpop.eup %2617 }
 0x2bf   :  { %v2620_v41 = vpop.eup %2619  ;;  %v2277_v59 = vpack.c.bf16 %v2618_v37, %v2614_v33  ;;  %v2516_v13 = vpop.f32.mrb[104].mxu0 }
 0x2c0   :  { %v2272_v42 = vpack.c.bf16 %v2620_v41, %v2616_v36  ;;  %v1467_v10 = vadd.f32 %v2516_v13, %v3378_v44  ;;  %v1458_v43 = vpop.f32.mrb[105].mxu0 }
 0x2c1   :  { %2421 = vst [vmem:[%s3554_s7 + $0x18] sm:$0xff] %v2277_v59   ;;  %v1459_v1 = vadd.f32 %v3378_v44, %v1458_v43  ;;  %v2517_v40 = vpop.f32.mrb[106].mxu0 }
 0x2c2   :  { %2420 = vst [vmem:[%s3554_s7 + $0x10] sm:$0xff] %v2272_v42   ;;  %2621 = vtanh.f32 %v1467_v10  ;;  %v1470_v45 = vadd.f32 %v2517_v40, %v3378_v44  ;;  %v1461_v5 = vpop.f32.mrb[107].mxu0 }
 0x2c3   :  { %2623 = vtanh.f32 %v1459_v1  ;;  %v1462_v8 = vadd.f32 %v3378_v44, %v1461_v5 }
 0x2c4   :  { %2625 = vtanh.f32 %v1470_v45 }
 0x2c5   :  { %2627 = vtanh.f32 %v1462_v8 }
 0x2cc   :  { %v2622_v38 = vpop.eup %2621 }
 0x2cd   :  { %v2624_v47 = vpop.eup %2623 }
 0x2ce   :  { %v2626_v48 = vpop.eup %2625 }
 0x2cf   :  { %v2628_v50 = vpop.eup %2627  ;;  %v2287_v51 = vpack.c.bf16 %v2626_v48, %v2622_v38  ;;  %v2520_v52 = vpop.f32.mrb[108].mxu0 }
 0x2d0   :  { %v2282_v53 = vpack.c.bf16 %v2628_v50, %v2624_v47  ;;  %v1483_v54 = vadd.f32 %v2520_v52, %v3378_v44  ;;  %v1474_v35 = vpop.f32.mrb[109].mxu0 }
 0x2d1   :  { %2423 = vst [vmem:[%s3554_s7 + $0x28] sm:$0xff] %v2287_v51   ;;  %v1475_v9 = vadd.f32 %v3378_v44, %v1474_v35  ;;  %v2521_v55 = vpop.f32.mrb[110].mxu0 }
 0x2d2   :  { %2422 = vst [vmem:[%s3554_s7 + $0x20] sm:$0xff] %v2282_v53   ;;  %2629 = vtanh.f32 %v1483_v54  ;;  %v1486_v56 = vadd.f32 %v2521_v55, %v3378_v44  ;;  %v1477_v57 = vpop.f32.mrb[111].mxu0 }
 0x2d3   :  { %2631 = vtanh.f32 %v1475_v9  ;;  %v1478_v58 = vadd.f32 %v3378_v44, %v1477_v57 }
 0x2d4   :  { %2633 = vtanh.f32 %v1486_v56 }
 0x2d5   :  { %2635 = vtanh.f32 %v1478_v58 }
 0x2dc   :  { %v2630_v60 = vpop.eup %2629 }
 0x2dd   :  { %v2632_v61 = vpop.eup %2631 }
 0x2de   :  { %v2634_v62 = vpop.eup %2633 }
 0x2df   :  { %v2636_v4 = vpop.eup %2635  ;;  %v2297_v39 = vpack.c.bf16 %v2634_v62, %v2630_v60  ;;  %v2524_v63 = vpop.f32.mrb[112].mxu0 }
 0x2e0   :  { %v2292_v0 = vpack.c.bf16 %v2636_v4, %v2632_v61  ;;  %v1499_v2 = vadd.f32 %v2524_v63, %v3378_v44  ;;  %v1490_v3 = vpop.f32.mrb[113].mxu0 }
 0x2e1   :  { %2425 = vst [vmem:[%s3554_s7 + $0x38] sm:$0xff] %v2297_v39   ;;  %v1491_v7 = vadd.f32 %v3378_v44, %v1490_v3  ;;  %v2525_v11 = vpop.f32.mrb[114].mxu0 }
 0x2e2   :  { %2424 = vst [vmem:[%s3554_s7 + $0x30] sm:$0xff] %v2292_v0   ;;  %2637 = vtanh.f32 %v1499_v2  ;;  %v1502_v14 = vadd.f32 %v2525_v11, %v3378_v44  ;;  %v1493_v34 = vpop.f32.mrb[115].mxu0 }
 0x2e3   :  { %2639 = vtanh.f32 %v1491_v7  ;;  %v1494_v12 = vadd.f32 %v3378_v44, %v1493_v34 }
 0x2e4   :  { %2641 = vtanh.f32 %v1502_v14 }
 0x2e5   :  { %2643 = vtanh.f32 %v1494_v12 }
 0x2ec   :  { %v2638_v15 = vpop.eup %2637 }
 0x2ed   :  { %v2640_v16 = vpop.eup %2639 }
 0x2ee   :  { %v2642_v17 = vpop.eup %2641 }
 0x2ef   :  { %v2644_v18 = vpop.eup %2643  ;;  %v2307_v19 = vpack.c.bf16 %v2642_v17, %v2638_v15  ;;  %v2528_v20 = vpop.f32.mrb[116].mxu0 }
 0x2f0   :  { %v2302_v21 = vpack.c.bf16 %v2644_v18, %v2640_v16  ;;  %v1515_v22 = vadd.f32 %v2528_v20, %v3378_v44  ;;  %v1506_v6 = vpop.f32.mrb[117].mxu0 }
 0x2f1   :  { %2427 = vst [vmem:[%s3554_s7 + $0x48] sm:$0xff] %v2307_v19   ;;  %v1507_v23 = vadd.f32 %v3378_v44, %v1506_v6  ;;  %v2529_v49 = vpop.f32.mrb[118].mxu0 }
 0x2f2   :  { %2426 = vst [vmem:[%s3554_s7 + $0x40] sm:$0xff] %v2302_v21   ;;  %2645 = vtanh.f32 %v1515_v22  ;;  %v1518_v24 = vadd.f32 %v2529_v49, %v3378_v44  ;;  %v1509_v25 = vpop.f32.mrb[119].mxu0 }
 0x2f3   :  { %2647 = vtanh.f32 %v1507_v23  ;;  %v1510_v26 = vadd.f32 %v3378_v44, %v1509_v25 }
 0x2f4   :  { %2649 = vtanh.f32 %v1518_v24 }
 0x2f5   :  { %2651 = vtanh.f32 %v1510_v26 }
 0x2fc   :  { %v2646_v27 = vpop.eup %2645 }
 0x2fd   :  { %v2648_v28 = vpop.eup %2647 }
 0x2fe   :  { %v2650_v29 = vpop.eup %2649 }
 0x2ff   :  { %v2652_v30 = vpop.eup %2651  ;;  %v2317_v31 = vpack.c.bf16 %v2650_v29, %v2646_v27  ;;  %v2532_v32 = vpop.f32.mrb[120].mxu0 }
 0x300   :  { %v2312_v46 = vpack.c.bf16 %v2652_v30, %v2648_v28  ;;  %v1531_v33 = vadd.f32 %v2532_v32, %v3378_v44  ;;  %v1522_v36 = vpop.f32.mrb[121].mxu0 }
 0x301   :  { %2429 = vst [vmem:[%s3554_s7 + $0x58] sm:$0xff] %v2317_v31   ;;  %v1523_v37 = vadd.f32 %v3378_v44, %v1522_v36  ;;  %v2533_v41 = vpop.f32.mrb[122].mxu0 }
 0x302   :  { %2428 = vst [vmem:[%s3554_s7 + $0x50] sm:$0xff] %v2312_v46   ;;  %2653 = vtanh.f32 %v1531_v33  ;;  %v1534_v59 = vadd.f32 %v2533_v41, %v3378_v44  ;;  %v1525_v13 = vpop.f32.mrb[123].mxu0 }
 0x303   :  { %2655 = vtanh.f32 %v1523_v37  ;;  %v1526_v42 = vadd.f32 %v3378_v44, %v1525_v13 }
 0x304   :  { %2657 = vtanh.f32 %v1534_v59 }
 0x305   :  { %2659 = vtanh.f32 %v1526_v42 }
 0x30c   :  { %v2654_v10 = vpop.eup %2653 }
 0x30d   :  { %v2656_v43 = vpop.eup %2655 }
 0x30e   :  { %v2658_v1 = vpop.eup %2657 }
 0x30f   :  { %v2660_v40 = vpop.eup %2659  ;;  %v2327_v45 = vpack.c.bf16 %v2658_v1, %v2654_v10  ;;  %v2536_v5 = vpop.f32.mrb[124].mxu0 }
 0x310   :  { %v2322_v8 = vpack.c.bf16 %v2660_v40, %v2656_v43  ;;  %v1547_v38 = vadd.f32 %v2536_v5, %v3378_v44  ;;  %v1538_v47 = vpop.f32.mrb[125].mxu0 }
 0x311   :  { %2431 = vst [vmem:[%s3554_s7 + $0x68] sm:$0xff] %v2327_v45   ;;  %v1539_v48 = vadd.f32 %v3378_v44, %v1538_v47  ;;  %v2537_v50 = vpop.f32.mrb[126].mxu0 }
 0x312   :  { %2430 = vst [vmem:[%s3554_s7 + $0x60] sm:$0xff] %v2322_v8   ;;  %2661 = vtanh.f32 %v1547_v38  ;;  %v1550_v51 = vadd.f32 %v2537_v50, %v3378_v44  ;;  %v1541_v52 = vpop.f32.mrb[127].mxu0 }
 0x313   :  { %2663 = vtanh.f32 %v1539_v48  ;;  %v1542_v53 = vadd.f32 %v3378_v44, %v1541_v52 }
 0x314   :  { %2665 = vtanh.f32 %v1550_v51 }
 0x315   :  { %2667 = vtanh.f32 %v1542_v53 }
 0x31c   :  { %v2662_v54 = vpop.eup %2661 }
 0x31d   :  { %v2664_v35 = vpop.eup %2663 }
 0x31e   :  { %v2666_v9 = vpop.eup %2665 }
 0x31f   :  { %v2668_v55 = vpop.eup %2667  ;;  %v2337_v56 = vpack.c.bf16 %v2666_v9, %v2662_v54  ;;  %v2540_v57 = vpop.f32.mrb[128].mxu0 }
 0x320   :  { %v2332_v58 = vpack.c.bf16 %v2668_v55, %v2664_v35  ;;  %v1563_v60 = vadd.f32 %v2540_v57, %v3378_v44  ;;  %v1554_v61 = vpop.f32.mrb[129].mxu0 }
 0x321   :  { %2433 = vst [vmem:[%s3554_s7 + $0x78] sm:$0xff] %v2337_v56   ;;  %v1555_v62 = vadd.f32 %v3378_v44, %v1554_v61  ;;  %v2541_v4 = vpop.f32.mrb[130].mxu0 }
 0x322   :  { %2432 = vst [vmem:[%s3554_s7 + $0x70] sm:$0xff] %v2332_v58   ;;  %2669 = vtanh.f32 %v1563_v60  ;;  %v1566_v39 = vadd.f32 %v2541_v4, %v3378_v44  ;;  %v1557_v63 = vpop.f32.mrb[131].mxu0 }
 0x323   :  { %2671 = vtanh.f32 %v1555_v62  ;;  %v1558_v0 = vadd.f32 %v3378_v44, %v1557_v63 }
 0x324   :  { %2673 = vtanh.f32 %v1566_v39 }
 0x325   :  { %2675 = vtanh.f32 %v1558_v0 }
 0x32c   :  { %v2670_v2 = vpop.eup %2669 }
 0x32d   :  { %v2672_v3 = vpop.eup %2671 }
 0x32e   :  { %v2674_v7 = vpop.eup %2673 }
 0x32f   :  { %v2676_v11 = vpop.eup %2675  ;;  %v2347_v14 = vpack.c.bf16 %v2674_v7, %v2670_v2  ;;  %v2544_v34 = vpop.f32.mrb[132].mxu0 }
 0x330   :  { %v2342_v12 = vpack.c.bf16 %v2676_v11, %v2672_v3  ;;  %v1579_v15 = vadd.f32 %v2544_v34, %v3378_v44  ;;  %v1570_v16 = vpop.f32.mrb[133].mxu0 }
 0x331   :  { %2435 = vst [vmem:[%s3554_s7 + $0x88] sm:$0xff] %v2347_v14   ;;  %v1571_v17 = vadd.f32 %v3378_v44, %v1570_v16  ;;  %v2545_v18 = vpop.f32.mrb[134].mxu0 }
 0x332   :  { %2434 = vst [vmem:[%s3554_s7 + $0x80] sm:$0xff] %v2342_v12   ;;  %2677 = vtanh.f32 %v1579_v15  ;;  %v1582_v19 = vadd.f32 %v2545_v18, %v3378_v44  ;;  %v1573_v20 = vpop.f32.mrb[135].mxu0 }
 0x333   :  { %2679 = vtanh.f32 %v1571_v17  ;;  %v1574_v21 = vadd.f32 %v3378_v44, %v1573_v20 }
 0x334   :  { %2681 = vtanh.f32 %v1582_v19 }
 0x335   :  { %2683 = vtanh.f32 %v1574_v21 }
 0x33c   :  { %v2678_v22 = vpop.eup %2677 }
 0x33d   :  { %v2680_v6 = vpop.eup %2679 }
 0x33e   :  { %v2682_v23 = vpop.eup %2681 }
 0x33f   :  { %v2684_v49 = vpop.eup %2683  ;;  %v2357_v24 = vpack.c.bf16 %v2682_v23, %v2678_v22  ;;  %v2548_v25 = vpop.f32.mrb[136].mxu0 }
 0x340   :  { %v2352_v26 = vpack.c.bf16 %v2684_v49, %v2680_v6  ;;  %v1595_v27 = vadd.f32 %v2548_v25, %v3378_v44  ;;  %v1586_v28 = vpop.f32.mrb[137].mxu0 }
 0x341   :  { %2437 = vst [vmem:[%s3554_s7 + $0x98] sm:$0xff] %v2357_v24   ;;  %v1587_v29 = vadd.f32 %v3378_v44, %v1586_v28  ;;  %v2549_v30 = vpop.f32.mrb[138].mxu0 }
 0x342   :  { %2436 = vst [vmem:[%s3554_s7 + $0x90] sm:$0xff] %v2352_v26   ;;  %2685 = vtanh.f32 %v1595_v27  ;;  %v1598_v31 = vadd.f32 %v2549_v30, %v3378_v44  ;;  %v1589_v32 = vpop.f32.mrb[139].mxu0 }
 0x343   :  { %2687 = vtanh.f32 %v1587_v29  ;;  %v1590_v46 = vadd.f32 %v3378_v44, %v1589_v32 }
 0x344   :  { %2689 = vtanh.f32 %v1598_v31 }
 0x345   :  { %2691 = vtanh.f32 %v1590_v46 }
 0x34c   :  { %v2686_v33 = vpop.eup %2685 }
 0x34d   :  { %v2688_v36 = vpop.eup %2687 }
 0x34e   :  { %v2690_v37 = vpop.eup %2689 }
 0x34f   :  { %v2692_v41 = vpop.eup %2691  ;;  %v2367_v59 = vpack.c.bf16 %v2690_v37, %v2686_v33  ;;  %v2552_v13 = vpop.f32.mrb[140].mxu0 }
 0x350   :  { %v2362_v42 = vpack.c.bf16 %v2692_v41, %v2688_v36  ;;  %v1611_v10 = vadd.f32 %v2552_v13, %v3378_v44  ;;  %v1602_v43 = vpop.f32.mrb[141].mxu0 }
 0x351   :  { %2439 = vst [vmem:[%s3554_s7 + $0xa8] sm:$0xff] %v2367_v59   ;;  %v1603_v1 = vadd.f32 %v3378_v44, %v1602_v43  ;;  %v2553_v40 = vpop.f32.mrb[142].mxu0 }
 0x352   :  { %2438 = vst [vmem:[%s3554_s7 + $0xa0] sm:$0xff] %v2362_v42   ;;  %2693 = vtanh.f32 %v1611_v10  ;;  %v1614_v45 = vadd.f32 %v2553_v40, %v3378_v44  ;;  %v1605_v5 = vpop.f32.mrb[143].mxu0 }
 0x353   :  { %2695 = vtanh.f32 %v1603_v1  ;;  %v1606_v8 = vadd.f32 %v3378_v44, %v1605_v5 }
 0x354   :  { %2697 = vtanh.f32 %v1614_v45 }
 0x355   :  { %2699 = vtanh.f32 %v1606_v8 }
 0x35c   :  { %v2694_v38 = vpop.eup %2693 }
 0x35d   :  { %v2696_v47 = vpop.eup %2695 }
 0x35e   :  { %v2698_v48 = vpop.eup %2697 }
 0x35f   :  { %v2700_v50 = vpop.eup %2699  ;;  %v2377_v51 = vpack.c.bf16 %v2698_v48, %v2694_v38  ;;  %v2556_v52 = vpop.f32.mrb[144].mxu0 }
 0x360   :  { %v2372_v53 = vpack.c.bf16 %v2700_v50, %v2696_v47  ;;  %v1627_v54 = vadd.f32 %v2556_v52, %v3378_v44  ;;  %v1618_v35 = vpop.f32.mrb[145].mxu0 }
 0x361   :  { %2441 = vst [vmem:[%s3554_s7 + $0xb8] sm:$0xff] %v2377_v51   ;;  %v1619_v9 = vadd.f32 %v3378_v44, %v1618_v35  ;;  %v2557_v55 = vpop.f32.mrb[146].mxu0 }
 0x362   :  { %2440 = vst [vmem:[%s3554_s7 + $0xb0] sm:$0xff] %v2372_v53   ;;  %2701 = vtanh.f32 %v1627_v54  ;;  %v1630_v56 = vadd.f32 %v2557_v55, %v3378_v44  ;;  %v1621_v57 = vpop.f32.mrb[147].mxu0 }
 0x363   :  { %2703 = vtanh.f32 %v1619_v9  ;;  %v1622_v58 = vadd.f32 %v3378_v44, %v1621_v57 }
 0x364   :  { %2705 = vtanh.f32 %v1630_v56 }
 0x365   :  { %2707 = vtanh.f32 %v1622_v58 }
 0x36c   :  { %v2702_v60 = vpop.eup %2701 }
 0x36d   :  { %v2704_v61 = vpop.eup %2703 }
 0x36e   :  { %v2706_v62 = vpop.eup %2705 }
 0x36f   :  { %v2708_v4 = vpop.eup %2707  ;;  %v2387_v39 = vpack.c.bf16 %v2706_v62, %v2702_v60  ;;  %v2560_v63 = vpop.f32.mrb[148].mxu0 }
 0x370   :  { %v2382_v0 = vpack.c.bf16 %v2708_v4, %v2704_v61  ;;  %v1643_v2 = vadd.f32 %v2560_v63, %v3378_v44  ;;  %v1634_v3 = vpop.f32.mrb[149].mxu0 }
 0x371   :  { %2443 = vst [vmem:[%s3554_s7 + $0xc8] sm:$0xff] %v2387_v39   ;;  %v1635_v7 = vadd.f32 %v3378_v44, %v1634_v3  ;;  %v2561_v11 = vpop.f32.mrb[150].mxu0 }
 0x372   :  { %2442 = vst [vmem:[%s3554_s7 + $0xc0] sm:$0xff] %v2382_v0   ;;  %2709 = vtanh.f32 %v1643_v2  ;;  %v1646_v14 = vadd.f32 %v2561_v11, %v3378_v44  ;;  %v1637_v34 = vpop.f32.mrb[151].mxu0 }
 0x373   :  { %2711 = vtanh.f32 %v1635_v7  ;;  %v1638_v12 = vadd.f32 %v3378_v44, %v1637_v34 }
 0x374   :  { %2713 = vtanh.f32 %v1646_v14 }
 0x375   :  { %2715 = vtanh.f32 %v1638_v12 }
 0x37c   :  { %v2710_v15 = vpop.eup %2709 }
 0x37d   :  { %v2712_v16 = vpop.eup %2711 }
 0x37e   :  { %v2714_v17 = vpop.eup %2713 }
 0x37f   :  { %v2716_v18 = vpop.eup %2715  ;;  %v2397_v19 = vpack.c.bf16 %v2714_v17, %v2710_v15  ;;  %v2564_v20 = vpop.f32.mrb[152].mxu0 }
 0x380   :  { %v2392_v21 = vpack.c.bf16 %v2716_v18, %v2712_v16  ;;  %v1659_v22 = vadd.f32 %v2564_v20, %v3378_v44  ;;  %v1650_v6 = vpop.f32.mrb[153].mxu0 }
 0x381   :  { %2445 = vst [vmem:[%s3554_s7 + $0xd8] sm:$0xff] %v2397_v19   ;;  %v1651_v23 = vadd.f32 %v3378_v44, %v1650_v6  ;;  %v2565_v49 = vpop.f32.mrb[154].mxu0 }
 0x382   :  { %2444 = vst [vmem:[%s3554_s7 + $0xd0] sm:$0xff] %v2392_v21   ;;  %2717 = vtanh.f32 %v1659_v22  ;;  %v1662_v24 = vadd.f32 %v2565_v49, %v3378_v44  ;;  %v1653_v25 = vpop.f32.mrb[155].mxu0 }
 0x383   :  { %2719 = vtanh.f32 %v1651_v23  ;;  %v1654_v26 = vadd.f32 %v3378_v44, %v1653_v25 }
 0x384   :  { %2721 = vtanh.f32 %v1662_v24 }
 0x385   :  { %2723 = vtanh.f32 %v1654_v26 }
 0x38c   :  { %v2718_v27 = vpop.eup %2717 }
 0x38d   :  { %v2720_v28 = vpop.eup %2719 }
 0x38e   :  { %v2722_v29 = vpop.eup %2721 }
 0x38f   :  { %v2724_v30 = vpop.eup %2723  ;;  %v2407_v31 = vpack.c.bf16 %v2722_v29, %v2718_v27  ;;  %v2568_v32 = vpop.f32.mrb[156].mxu0 }
 0x390   :  { %v2402_v46 = vpack.c.bf16 %v2724_v30, %v2720_v28  ;;  %v1675_v33 = vadd.f32 %v2568_v32, %v3378_v44  ;;  %v1666_v36 = vpop.f32.mrb[157].mxu0 }
 0x391   :  { %2447 = vst [vmem:[%s3554_s7 + $0xe8] sm:$0xff] %v2407_v31   ;;  %v1667_v37 = vadd.f32 %v3378_v44, %v1666_v36  ;;  %v2569_v41 = vpop.f32.mrb[158].mxu0 }
 0x392   :  { %2446 = vst [vmem:[%s3554_s7 + $0xe0] sm:$0xff] %v2402_v46   ;;  %2725 = vtanh.f32 %v1675_v33  ;;  %v1678_v59 = vadd.f32 %v2569_v41, %v3378_v44  ;;  %v1669_v13 = vpop.f32.mrb[159].mxu0 }
 0x393   :  { %2727 = vtanh.f32 %v1667_v37  ;;  %v1670_v42 = vadd.f32 %v3378_v44, %v1669_v13 }
 0x394   :  { %2729 = vtanh.f32 %v1678_v59 }
 0x395   :  { %2731 = vtanh.f32 %v1670_v42 }
 0x39c   :  { %v2726_v10 = vpop.eup %2725 }
 0x39d   :  { %v2728_v43 = vpop.eup %2727 }
 0x39e   :  { %v2730_v1 = vpop.eup %2729 }
 0x39f   :  { %v2732_v40 = vpop.eup %2731  ;;  %v2417_v45 = vpack.c.bf16 %v2730_v1, %v2726_v10 }
 0x3a0   :  { %v2412_v5 = vpack.c.bf16 %v2732_v40, %v2728_v43 }
 0x3a1   :  { %2449 = vst [vmem:[%s3554_s7 + $0xf8] sm:$0xff] %v2417_v45  }
 0x3a2   :  { %2448 = vst [vmem:[%s3554_s7 + $0xf0] sm:$0xff] %v2412_v5  }

</bundles_post_ra>
